<compile_context>
chip_gen: v7x
topology: tpu7x:2x2x1
jax: 0.10.0
libtpu: 0.0.40
codegen_flags: <defaults>
</compile_context>

<pallas_src>
from functools import partial

import jax
import jax.numpy as jnp
from jax.experimental import pallas as pl
from jax.experimental.pallas import tpu as pltpu

# ------------------------- model hyper-parameters (small) -------------------
N_LAYERS = 2
N_HEADS = 4
EMBED_SIZE = 32
MLP_HIDDEN = 64
MAX_CONTEXT = 16
VOCAB_SIZE = 64
WITH_RESIDUALS = True
LN_EPS = 1e-5                                      # nn.LayerNorm default
HEAD_DIM = EMBED_SIZE // N_HEADS
VOCAB_PAD = ((VOCAB_SIZE + 127) // 128) * 128      # lane-dense output: 64 -> 128


# ------------------------------ in-kernel math -------------------------------
def _erf(z):
    # Exact-GELU erf (PyTorch nn.GELU default is the erf form).  Abramowitz &
    # Stegun 7.1.26 polynomial, max abs error ~1.5e-7 (f32 round-off); uses only
    # ops guaranteed to lower in Mosaic (abs, exp, mul/add, select).
    a1, a2, a3, a4, a5 = 0.254829592, -0.284496736, 1.421413741, -1.453152027, 1.061405429
    p = 0.3275911
    az = jnp.abs(z)
    t = 1.0 / (1.0 + p * az)
    poly = ((((a5 * t + a4) * t + a3) * t + a2) * t + a1) * t
    e = 1.0 - poly * jnp.exp(-az * az)
    return jnp.where(z < 0.0, -e, e)


def _gelu_exact(x):
    return 0.5 * x * (1.0 + _erf(x * 0.7071067811865475))


# ------------------------------- fused kernel --------------------------------
def fused_transformer_kernel(
        x_ref,
        ln1_g_ref, ln1_b_ref, ln2_g_ref, ln2_b_ref,
        wqkv_ref, bqkv_ref, wo_ref, bo_ref,
        w1_ref, b1_ref, w2_ref, b2_ref,
        lnf_g_ref, lnf_b_ref, wout_ref, bout_ref,
        o_ref,
        *, n_layers, n_heads, with_residuals):
    f32 = jnp.float32
    x = x_ref[0].astype(f32)                       # (N, D)
    n, d = x.shape
    dh = d // n_heads
    scale = 1.0 / (dh ** 0.5)

    # Causal mask, shared by all layers / heads.
    row = jax.lax.broadcasted_iota(jnp.int32, (n, n), 0)
    col = jax.lax.broadcasted_iota(jnp.int32, (n, n), 1)
    causal = col <= row

    def mm(a, w):
        # bf16 MXU inputs, f32 accumulation (weights already stored bf16).
        return jnp.dot(a.astype(jnp.bfloat16), w.astype(jnp.bfloat16),
                       preferred_element_type=f32)

    def layer_norm(v, g, b):
        # Single-pass statistics: var = E[x^2] - mu^2 (biased, matches PyTorch).
        mu = jnp.mean(v, axis=-1, keepdims=True)
        var = jnp.mean(v * v, axis=-1, keepdims=True) - mu * mu
        return (v - mu) * jax.lax.rsqrt(var + LN_EPS) * g + b

    def softmax_last(s):
        s = s - jnp.max(s, axis=-1, keepdims=True)
        e = jnp.exp(s)
        return e / jnp.sum(e, axis=-1, keepdims=True)

    for l in range(n_layers):                       # static unroll (L=2)
        # ---------------- causal self-attention block ------------------------
        x1 = x
        h = layer_norm(x1, ln1_g_ref[l], ln1_b_ref[l])
        # Q/K/V split is along a leading weight axis: three full-width matmuls,
        # no lane-offset slicing of a fused (D, 3D) qkv output.
        q = mm(h, wqkv_ref[l, 0]) + bqkv_ref[l, 0]          # (N, D)
        k = mm(h, wqkv_ref[l, 1]) + bqkv_ref[l, 1]
        v = mm(h, wqkv_ref[l, 2]) + bqkv_ref[l, 2]

        # Per-head attention; each head's context goes straight through its own
        # Wo slab and accumulates into (N, D) — no lane-axis concatenate.
        # TODO(synk): at MXU-scale head dims replace this static head loop with
        # a single head-batched dot_general ('hnd,hmd->hnm').
        attn = jnp.zeros((n, d), f32)
        for hd in range(n_heads):
            sl = slice(hd * dh, (hd + 1) * dh)
            s = mm(q[:, sl], k[:, sl].T) * scale            # (N, N)
            p = softmax_last(jnp.where(causal, s, -1e30))
            ctx = mm(p, v[:, sl])                           # (N, dh)
            attn = attn + mm(ctx, wo_ref[l, hd])            # (N, D)
        attn = attn + bo_ref[l]
        # TODO(synk): nn.Dropout is identity at inference time; no stochastic mask.
        x2 = (attn + x1) if with_residuals else attn

        # ---------------------------- MLP block -------------------------------
        h2 = layer_norm(x2, ln2_g_ref[l], ln2_b_ref[l])
        m = _gelu_exact(mm(h2, w1_ref[l]) + b1_ref[l])
        m = mm(m, w2_ref[l]) + b2_ref[l]
        x = (m + x2) if with_residuals else m

    # -------------- final LayerNorm + lane-padded vocab projection ------------
    xf = layer_norm(x, lnf_g_ref[...], lnf_b_ref[...])
    logits = mm(xf, wout_ref[...]) + bout_ref[...]          # (N, VOCAB_PAD)
    o_ref[0] = logits.astype(o_ref.dtype)


# ------------------------------- forward wrapper ------------------------------
_WEIGHT_KEYS = ("ln1_g", "ln1_b", "ln2_g", "ln2_b",
                "wqkv", "bqkv", "wo", "bo",
                "w1", "b1", "w2", "b2",
                "lnf_g", "lnf_b", "w_out", "b_out")


def transformer_lm_forward(params, tokens):
    """tokens: (B, N) int32 -> logits (B, N, VOCAB_SIZE) float32."""
    b, n = tokens.shape
    d = EMBED_SIZE
    # Embedding gather + positional add: plain-JAX glue (data-dependent gather).
    x = params["tok_emb"][tokens] + params["pos_emb"][:n][None, :, :]   # (B,N,D) f32
    # TODO(synk): nn.Dropout after the embedding is identity at inference time.

    weights = [params[k] for k in _WEIGHT_KEYS]

    def resident(a):
        # Whole-array block with a constant index_map -> stays VMEM-resident
        # across all grid steps (no per-step weight DMA).
        return pl.BlockSpec(a.shape, lambda i, _nd=a.ndim: (0,) * _nd)

    logits_padded = pl.pallas_call(
        partial(fused_transformer_kernel,
                n_layers=N_LAYERS, n_heads=N_HEADS, with_residuals=WITH_RESIDUALS),
        out_shape=jax.ShapeDtypeStruct((b, n, VOCAB_PAD), jnp.float32),
        grid=(b,),
        in_specs=[pl.BlockSpec((1, n, d), lambda i: (i, 0, 0))]
                 + [resident(a) for a in weights],
        out_specs=pl.BlockSpec((1, n, VOCAB_PAD), lambda i: (i, 0, 0)),
        compiler_params=pltpu.CompilerParams(
            dimension_semantics=("parallel",),          # batch over v7x's 2 TCs
            vmem_limit_bytes=32 * 1024 * 1024),
    )(x, *weights)
    return logits_padded[..., :VOCAB_SIZE]


# --------------------------------- parameters ---------------------------------
def init_params(key):
    """init_method='normal': N(0, 0.02) embedding/linear weights, zero biases,
    LayerNorm weight=1 / bias=0.  Matmul weights stored (in, out), stacked per
    layer, cast to bf16 for the MXU; biases / LN params stay f32."""
    D, L, H, HM = EMBED_SIZE, N_LAYERS, N_HEADS, MLP_HIDDEN
    dh = HEAD_DIM
    ks = jax.random.split(key, 7)

    def nrm(k, shape):
        return 0.02 * jax.random.normal(k, shape, dtype=jnp.float32)

    w_out = jnp.pad(nrm(ks[6], (D, VOCAB_SIZE)),
                    ((0, 0), (0, VOCAB_PAD - VOCAB_SIZE)))      # zero-pad lanes

    return {
        "tok_emb": nrm(ks[0], (VOCAB_SIZE, D)),
        "pos_emb": nrm(ks[1], (MAX_CONTEXT, D)),
        "ln1_g": jnp.ones((L, 1, D), jnp.float32),
        "ln1_b": jnp.zeros((L, 1, D), jnp.float32),
        "ln2_g": jnp.ones((L, 1, D), jnp.float32),
        "ln2_b": jnp.zeros((L, 1, D), jnp.float32),
        "wqkv": nrm(ks[2], (L, 3, D, D)).astype(jnp.bfloat16),   # [l, {q,k,v}], (in,out)
        "bqkv": jnp.zeros((L, 3, 1, D), jnp.float32),
        "wo": nrm(ks[3], (L, H, dh, D)).astype(jnp.bfloat16),    # per-head Wo slabs
        "bo": jnp.zeros((L, 1, D), jnp.float32),
        "w1": nrm(ks[4], (L, D, HM)).astype(jnp.bfloat16),
        "b1": jnp.zeros((L, 1, HM), jnp.float32),
        "w2": nrm(ks[5], (L, HM, D)).astype(jnp.bfloat16),
        "b2": jnp.zeros((L, 1, D), jnp.float32),
        "lnf_g": jnp.ones((1, D), jnp.float32),
        "lnf_b": jnp.zeros((1, D), jnp.float32),
        "w_out": w_out.astype(jnp.bfloat16),                     # (D, VOCAB_PAD)
        "b_out": jnp.zeros((1, VOCAB_PAD), jnp.float32),
    }


# ------------------------------------ main -------------------------------------
if __name__ == "__main__":
    key = jax.random.PRNGKey(0)
    pkey, dkey = jax.random.split(key)
    params = init_params(pkey)

    B, N = 2, 8
    tokens = jax.random.randint(dkey, (B, N), 0, VOCAB_SIZE, dtype=jnp.int32)

    logits = jax.jit(transformer_lm_forward)(params, tokens)
    jax.block_until_ready(logits)
    assert logits.shape == (B, N, VOCAB_SIZE)
    assert logits.dtype == jnp.float32
    print("KERNEL_OK")
</pallas_src>

<mosaic_0001>
module attributes {stable_mosaic.version = 11 : i64} {
  func.func @fused_transformer_kernel(%arg0: i32, %arg1: memref<1x8x32xf32, #tpu.memory_space<vmem>>, %arg2: memref<2x1x32xf32, #tpu.memory_space<vmem>>, %arg3: memref<2x1x32xf32, #tpu.memory_space<vmem>>, %arg4: memref<2x1x32xf32, #tpu.memory_space<vmem>>, %arg5: memref<2x1x32xf32, #tpu.memory_space<vmem>>, %arg6: memref<2x3x32x32xbf16, #tpu.memory_space<vmem>>, %arg7: memref<2x3x1x32xf32, #tpu.memory_space<vmem>>, %arg8: memref<2x4x8x32xbf16, #tpu.memory_space<vmem>>, %arg9: memref<2x1x32xf32, #tpu.memory_space<vmem>>, %arg10: memref<2x32x64xbf16, #tpu.memory_space<vmem>>, %arg11: memref<2x1x64xf32, #tpu.memory_space<vmem>>, %arg12: memref<2x64x32xbf16, #tpu.memory_space<vmem>>, %arg13: memref<2x1x32xf32, #tpu.memory_space<vmem>>, %arg14: memref<1x32xf32, #tpu.memory_space<vmem>>, %arg15: memref<1x32xf32, #tpu.memory_space<vmem>>, %arg16: memref<32x128xbf16, #tpu.memory_space<vmem>>, %arg17: memref<1x128xf32, #tpu.memory_space<vmem>>, %arg18: memref<1x8x128xf32, #tpu.memory_space<vmem>>) attributes {dimension_semantics = [#tpu.dimension_semantics<parallel>], iteration_bounds = array<i64: 2>, scalar_prefetch = 0 : i64, scratch_operands = 0 : i64, tpu.core_type = #tpu.core_type<tc>, window_params = [{transform_indices = @transform_0, window_bounds = array<i64: 1, 8, 32>}, {pipeline_mode = #tpu.pipeline_mode<synchronous>, transform_indices = @transform_1, window_bounds = array<i64: 2, 1, 32>}, {pipeline_mode = #tpu.pipeline_mode<synchronous>, transform_indices = @transform_2, window_bounds = array<i64: 2, 1, 32>}, {pipeline_mode = #tpu.pipeline_mode<synchronous>, transform_indices = @transform_3, window_bounds = array<i64: 2, 1, 32>}, {pipeline_mode = #tpu.pipeline_mode<synchronous>, transform_indices = @transform_4, window_bounds = array<i64: 2, 1, 32>}, {pipeline_mode = #tpu.pipeline_mode<synchronous>, transform_indices = @transform_5, window_bounds = array<i64: 2, 3, 32, 32>}, {pipeline_mode = #tpu.pipeline_mode<synchronous>, transform_indices = @transform_6, window_bounds = array<i64: 2, 3, 1, 32>}, {pipeline_mode = #tpu.pipeline_mode<synchronous>, transform_indices = @transform_7, window_bounds = array<i64: 2, 4, 8, 32>}, {pipeline_mode = #tpu.pipeline_mode<synchronous>, transform_indices = @transform_8, window_bounds = array<i64: 2, 1, 32>}, {pipeline_mode = #tpu.pipeline_mode<synchronous>, transform_indices = @transform_9, window_bounds = array<i64: 2, 32, 64>}, {pipeline_mode = #tpu.pipeline_mode<synchronous>, transform_indices = @transform_10, window_bounds = array<i64: 2, 1, 64>}, {pipeline_mode = #tpu.pipeline_mode<synchronous>, transform_indices = @transform_11, window_bounds = array<i64: 2, 64, 32>}, {pipeline_mode = #tpu.pipeline_mode<synchronous>, transform_indices = @transform_12, window_bounds = array<i64: 2, 1, 32>}, {pipeline_mode = #tpu.pipeline_mode<synchronous>, transform_indices = @transform_13, window_bounds = array<i64: 1, 32>}, {pipeline_mode = #tpu.pipeline_mode<synchronous>, transform_indices = @transform_14, window_bounds = array<i64: 1, 32>}, {pipeline_mode = #tpu.pipeline_mode<synchronous>, transform_indices = @transform_15, window_bounds = array<i64: 32, 128>}, {pipeline_mode = #tpu.pipeline_mode<synchronous>, transform_indices = @transform_16, window_bounds = array<i64: 1, 128>}, {transform_indices = @transform_17, window_bounds = array<i64: 1, 8, 128>}]} {
    %c0 = arith.constant 0 : index
    %c0_0 = arith.constant 0 : index
    %c0_1 = arith.constant 0 : index
    %0 = vector.load %arg1[%c0, %c0_0, %c0_1] : memref<1x8x32xf32, #tpu.memory_space<vmem>>, vector<1x8x32xf32>
    %1 = vector.shape_cast %0 : vector<1x8x32xf32> to vector<8x32xf32>
    %2 = tpu.iota {dimensions = array<i32: 0>} : vector<8x8xi32>
    %3 = tpu.iota {dimensions = array<i32: 1>} : vector<8x8xi32>
    %4 = arith.cmpi sle, %3, %2 : vector<8x8xi32>
    %c0_2 = arith.constant 0 : index
    %c0_3 = arith.constant 0 : index
    %c0_4 = arith.constant 0 : index
    %5 = vector.load %arg2[%c0_2, %c0_3, %c0_4] : memref<2x1x32xf32, #tpu.memory_space<vmem>>, vector<1x1x32xf32>
    %6 = vector.shape_cast %5 : vector<1x1x32xf32> to vector<1x32xf32>
    %c0_5 = arith.constant 0 : index
    %c0_6 = arith.constant 0 : index
    %c0_7 = arith.constant 0 : index
    %7 = vector.load %arg3[%c0_5, %c0_6, %c0_7] : memref<2x1x32xf32, #tpu.memory_space<vmem>>, vector<1x1x32xf32>
    %8 = vector.shape_cast %7 : vector<1x1x32xf32> to vector<1x32xf32>
    %cst = arith.constant dense<0.000000e+00> : vector<8xf32>
    %9 = vector.multi_reduction <add>, %1, %cst [1] : vector<8x32xf32> to vector<8xf32>
    %10 = vector.shape_cast %9 : vector<8xf32> to vector<8x1xf32>
    %cst_8 = arith.constant 3.200000e+01 : f32
    %11 = vector.broadcast %cst_8 : f32 to vector<8x1xf32>
    %12 = arith.divf %10, %11 : vector<8x1xf32>
    %13 = arith.mulf %1, %1 : vector<8x32xf32>
    %cst_9 = arith.constant dense<0.000000e+00> : vector<8xf32>
    %14 = vector.multi_reduction <add>, %13, %cst_9 [1] : vector<8x32xf32> to vector<8xf32>
    %15 = vector.shape_cast %14 : vector<8xf32> to vector<8x1xf32>
    %cst_10 = arith.constant 3.200000e+01 : f32
    %16 = vector.broadcast %cst_10 : f32 to vector<8x1xf32>
    %17 = arith.divf %15, %16 : vector<8x1xf32>
    %18 = arith.mulf %12, %12 : vector<8x1xf32>
    %19 = arith.subf %17, %18 : vector<8x1xf32>
    %20 = vector.broadcast %12 : vector<8x1xf32> to vector<8x32xf32>
    %21 = arith.subf %1, %20 : vector<8x32xf32>
    %cst_11 = arith.constant 9.99999974E-6 : f32
    %22 = vector.broadcast %cst_11 : f32 to vector<8x1xf32>
    %23 = arith.addf %19, %22 : vector<8x1xf32>
    %24 = math.rsqrt %23 : vector<8x1xf32>
    %25 = vector.broadcast %24 : vector<8x1xf32> to vector<8x32xf32>
    %26 = arith.mulf %21, %25 : vector<8x32xf32>
    %27 = vector.broadcast %6 : vector<1x32xf32> to vector<8x32xf32>
    %28 = arith.mulf %26, %27 : vector<8x32xf32>
    %29 = vector.broadcast %8 : vector<1x32xf32> to vector<8x32xf32>
    %30 = arith.addf %28, %29 : vector<8x32xf32>
    %c0_12 = arith.constant 0 : index
    %c0_13 = arith.constant 0 : index
    %c0_14 = arith.constant 0 : index
    %c0_15 = arith.constant 0 : index
    %31 = vector.load %arg6[%c0_12, %c0_13, %c0_14, %c0_15] : memref<2x3x32x32xbf16, #tpu.memory_space<vmem>>, vector<1x1x32x32xbf16>
    %32 = vector.shape_cast %31 : vector<1x1x32x32xbf16> to vector<32x32xbf16>
    %33 = arith.truncf %30 : vector<8x32xf32> to vector<8x32xbf16>
    %cst_16 = arith.constant dense<0.000000e+00> : vector<8x32xf32>
    %34 = tpu.matmul %33, %32, %cst_16 {dimension_numbers = #tpu.dot_dimension_numbers<[1], [0], [0], [1], [0, 0, 1, 1], [], []>} : vector<8x32xbf16>, vector<32x32xbf16>, vector<8x32xf32> -> vector<8x32xf32>
    %c0_17 = arith.constant 0 : index
    %c0_18 = arith.constant 0 : index
    %c0_19 = arith.constant 0 : index
    %c0_20 = arith.constant 0 : index
    %35 = vector.load %arg7[%c0_17, %c0_18, %c0_19, %c0_20] : memref<2x3x1x32xf32, #tpu.memory_space<vmem>>, vector<1x1x1x32xf32>
    %36 = vector.shape_cast %35 : vector<1x1x1x32xf32> to vector<1x32xf32>
    %37 = vector.broadcast %36 : vector<1x32xf32> to vector<8x32xf32>
    %38 = arith.addf %34, %37 : vector<8x32xf32>
    %c0_21 = arith.constant 0 : index
    %c1 = arith.constant 1 : index
    %c0_22 = arith.constant 0 : index
    %c0_23 = arith.constant 0 : index
    %39 = vector.load %arg6[%c0_21, %c1, %c0_22, %c0_23] : memref<2x3x32x32xbf16, #tpu.memory_space<vmem>>, vector<1x1x32x32xbf16>
    %40 = vector.shape_cast %39 : vector<1x1x32x32xbf16> to vector<32x32xbf16>
    %41 = arith.truncf %30 : vector<8x32xf32> to vector<8x32xbf16>
    %cst_24 = arith.constant dense<0.000000e+00> : vector<8x32xf32>
    %42 = tpu.matmul %41, %40, %cst_24 {dimension_numbers = #tpu.dot_dimension_numbers<[1], [0], [0], [1], [0, 0, 1, 1], [], []>} : vector<8x32xbf16>, vector<32x32xbf16>, vector<8x32xf32> -> vector<8x32xf32>
    %c0_25 = arith.constant 0 : index
    %c1_26 = arith.constant 1 : index
    %c0_27 = arith.constant 0 : index
    %c0_28 = arith.constant 0 : index
    %43 = vector.load %arg7[%c0_25, %c1_26, %c0_27, %c0_28] : memref<2x3x1x32xf32, #tpu.memory_space<vmem>>, vector<1x1x1x32xf32>
    %44 = vector.shape_cast %43 : vector<1x1x1x32xf32> to vector<1x32xf32>
    %45 = vector.broadcast %44 : vector<1x32xf32> to vector<8x32xf32>
    %46 = arith.addf %42, %45 : vector<8x32xf32>
    %c0_29 = arith.constant 0 : index
    %c2 = arith.constant 2 : index
    %c0_30 = arith.constant 0 : index
    %c0_31 = arith.constant 0 : index
    %47 = vector.load %arg6[%c0_29, %c2, %c0_30, %c0_31] : memref<2x3x32x32xbf16, #tpu.memory_space<vmem>>, vector<1x1x32x32xbf16>
    %48 = vector.shape_cast %47 : vector<1x1x32x32xbf16> to vector<32x32xbf16>
    %49 = arith.truncf %30 : vector<8x32xf32> to vector<8x32xbf16>
    %cst_32 = arith.constant dense<0.000000e+00> : vector<8x32xf32>
    %50 = tpu.matmul %49, %48, %cst_32 {dimension_numbers = #tpu.dot_dimension_numbers<[1], [0], [0], [1], [0, 0, 1, 1], [], []>} : vector<8x32xbf16>, vector<32x32xbf16>, vector<8x32xf32> -> vector<8x32xf32>
    %c0_33 = arith.constant 0 : index
    %c2_34 = arith.constant 2 : index
    %c0_35 = arith.constant 0 : index
    %c0_36 = arith.constant 0 : index
    %51 = vector.load %arg7[%c0_33, %c2_34, %c0_35, %c0_36] : memref<2x3x1x32xf32, #tpu.memory_space<vmem>>, vector<1x1x1x32xf32>
    %52 = vector.shape_cast %51 : vector<1x1x1x32xf32> to vector<1x32xf32>
    %53 = vector.broadcast %52 : vector<1x32xf32> to vector<8x32xf32>
    %54 = arith.addf %50, %53 : vector<8x32xf32>
    %cst_37 = arith.constant 0.000000e+00 : f32
    %55 = vector.broadcast %cst_37 : f32 to vector<8x32xf32>
    %56 = vector.extract_strided_slice %38 {offsets = [0, 0], sizes = [8, 8], strides = [1, 1]} : vector<8x32xf32> to vector<8x8xf32>
    %57 = vector.extract_strided_slice %46 {offsets = [0, 0], sizes = [8, 8], strides = [1, 1]} : vector<8x32xf32> to vector<8x8xf32>
    %58 = tpu.transpose %57, [1, 0] : vector<8x8xf32> -> vector<8x8xf32>
    %59 = arith.truncf %56 : vector<8x8xf32> to vector<8x8xbf16>
    %60 = arith.truncf %58 : vector<8x8xf32> to vector<8x8xbf16>
    %cst_38 = arith.constant dense<0.000000e+00> : vector<8x8xf32>
    %61 = tpu.matmul %59, %60, %cst_38 {dimension_numbers = #tpu.dot_dimension_numbers<[1], [0], [0], [1], [0, 0, 1, 1], [], []>} : vector<8x8xbf16>, vector<8x8xbf16>, vector<8x8xf32> -> vector<8x8xf32>
    %cst_39 = arith.constant 0.353553385 : f32
    %62 = vector.broadcast %cst_39 : f32 to vector<8x8xf32>
    %63 = arith.mulf %61, %62 : vector<8x8xf32>
    %cst_40 = arith.constant -1.000000e+30 : f32
    %64 = vector.broadcast %cst_40 : f32 to vector<8x8xf32>
    %65 = arith.select %4, %63, %64 : vector<8x8xi1>, vector<8x8xf32>
    %cst_41 = arith.constant dense<0xFF800000> : vector<8xf32>
    %66 = vector.multi_reduction <maximumf>, %65, %cst_41 [1] : vector<8x8xf32> to vector<8xf32>
    %67 = vector.shape_cast %66 : vector<8xf32> to vector<8x1xf32>
    %68 = vector.broadcast %67 : vector<8x1xf32> to vector<8x8xf32>
    %69 = arith.subf %65, %68 : vector<8x8xf32>
    %70 = math.exp %69 : vector<8x8xf32>
    %cst_42 = arith.constant dense<0.000000e+00> : vector<8xf32>
    %71 = vector.multi_reduction <add>, %70, %cst_42 [1] : vector<8x8xf32> to vector<8xf32>
    %72 = vector.shape_cast %71 : vector<8xf32> to vector<8x1xf32>
    %73 = vector.broadcast %72 : vector<8x1xf32> to vector<8x8xf32>
    %74 = arith.divf %70, %73 : vector<8x8xf32>
    %75 = vector.extract_strided_slice %54 {offsets = [0, 0], sizes = [8, 8], strides = [1, 1]} : vector<8x32xf32> to vector<8x8xf32>
    %76 = arith.truncf %74 : vector<8x8xf32> to vector<8x8xbf16>
    %77 = arith.truncf %75 : vector<8x8xf32> to vector<8x8xbf16>
    %cst_43 = arith.constant dense<0.000000e+00> : vector<8x8xf32>
    %78 = tpu.matmul %76, %77, %cst_43 {dimension_numbers = #tpu.dot_dimension_numbers<[1], [0], [0], [1], [0, 0, 1, 1], [], []>} : vector<8x8xbf16>, vector<8x8xbf16>, vector<8x8xf32> -> vector<8x8xf32>
    %c0_44 = arith.constant 0 : index
    %c0_45 = arith.constant 0 : index
    %c0_46 = arith.constant 0 : index
    %c0_47 = arith.constant 0 : index
    %79 = vector.load %arg8[%c0_44, %c0_45, %c0_46, %c0_47] : memref<2x4x8x32xbf16, #tpu.memory_space<vmem>>, vector<1x1x8x32xbf16>
    %80 = vector.shape_cast %79 : vector<1x1x8x32xbf16> to vector<8x32xbf16>
    %81 = arith.truncf %78 : vector<8x8xf32> to vector<8x8xbf16>
    %cst_48 = arith.constant dense<0.000000e+00> : vector<8x32xf32>
    %82 = tpu.matmul %81, %80, %cst_48 {dimension_numbers = #tpu.dot_dimension_numbers<[1], [0], [0], [1], [0, 0, 1, 1], [], []>} : vector<8x8xbf16>, vector<8x32xbf16>, vector<8x32xf32> -> vector<8x32xf32>
    %83 = arith.addf %55, %82 : vector<8x32xf32>
    %84 = vector.extract_strided_slice %38 {offsets = [0, 8], sizes = [8, 8], strides = [1, 1]} : vector<8x32xf32> to vector<8x8xf32>
    %85 = vector.extract_strided_slice %46 {offsets = [0, 8], sizes = [8, 8], strides = [1, 1]} : vector<8x32xf32> to vector<8x8xf32>
    %86 = tpu.transpose %85, [1, 0] : vector<8x8xf32> -> vector<8x8xf32>
    %87 = arith.truncf %84 : vector<8x8xf32> to vector<8x8xbf16>
    %88 = arith.truncf %86 : vector<8x8xf32> to vector<8x8xbf16>
    %cst_49 = arith.constant dense<0.000000e+00> : vector<8x8xf32>
    %89 = tpu.matmul %87, %88, %cst_49 {dimension_numbers = #tpu.dot_dimension_numbers<[1], [0], [0], [1], [0, 0, 1, 1], [], []>} : vector<8x8xbf16>, vector<8x8xbf16>, vector<8x8xf32> -> vector<8x8xf32>
    %cst_50 = arith.constant 0.353553385 : f32
    %90 = vector.broadcast %cst_50 : f32 to vector<8x8xf32>
    %91 = arith.mulf %89, %90 : vector<8x8xf32>
    %cst_51 = arith.constant -1.000000e+30 : f32
    %92 = vector.broadcast %cst_51 : f32 to vector<8x8xf32>
    %93 = arith.select %4, %91, %92 : vector<8x8xi1>, vector<8x8xf32>
    %cst_52 = arith.constant dense<0xFF800000> : vector<8xf32>
    %94 = vector.multi_reduction <maximumf>, %93, %cst_52 [1] : vector<8x8xf32> to vector<8xf32>
    %95 = vector.shape_cast %94 : vector<8xf32> to vector<8x1xf32>
    %96 = vector.broadcast %95 : vector<8x1xf32> to vector<8x8xf32>
    %97 = arith.subf %93, %96 : vector<8x8xf32>
    %98 = math.exp %97 : vector<8x8xf32>
    %cst_53 = arith.constant dense<0.000000e+00> : vector<8xf32>
    %99 = vector.multi_reduction <add>, %98, %cst_53 [1] : vector<8x8xf32> to vector<8xf32>
    %100 = vector.shape_cast %99 : vector<8xf32> to vector<8x1xf32>
    %101 = vector.broadcast %100 : vector<8x1xf32> to vector<8x8xf32>
    %102 = arith.divf %98, %101 : vector<8x8xf32>
    %103 = vector.extract_strided_slice %54 {offsets = [0, 8], sizes = [8, 8], strides = [1, 1]} : vector<8x32xf32> to vector<8x8xf32>
    %104 = arith.truncf %102 : vector<8x8xf32> to vector<8x8xbf16>
    %105 = arith.truncf %103 : vector<8x8xf32> to vector<8x8xbf16>
    %cst_54 = arith.constant dense<0.000000e+00> : vector<8x8xf32>
    %106 = tpu.matmul %104, %105, %cst_54 {dimension_numbers = #tpu.dot_dimension_numbers<[1], [0], [0], [1], [0, 0, 1, 1], [], []>} : vector<8x8xbf16>, vector<8x8xbf16>, vector<8x8xf32> -> vector<8x8xf32>
    %c0_55 = arith.constant 0 : index
    %c1_56 = arith.constant 1 : index
    %c0_57 = arith.constant 0 : index
    %c0_58 = arith.constant 0 : index
    %107 = vector.load %arg8[%c0_55, %c1_56, %c0_57, %c0_58] : memref<2x4x8x32xbf16, #tpu.memory_space<vmem>>, vector<1x1x8x32xbf16>
    %108 = vector.shape_cast %107 : vector<1x1x8x32xbf16> to vector<8x32xbf16>
    %109 = arith.truncf %106 : vector<8x8xf32> to vector<8x8xbf16>
    %cst_59 = arith.constant dense<0.000000e+00> : vector<8x32xf32>
    %110 = tpu.matmul %109, %108, %cst_59 {dimension_numbers = #tpu.dot_dimension_numbers<[1], [0], [0], [1], [0, 0, 1, 1], [], []>} : vector<8x8xbf16>, vector<8x32xbf16>, vector<8x32xf32> -> vector<8x32xf32>
    %111 = arith.addf %83, %110 : vector<8x32xf32>
    %112 = vector.extract_strided_slice %38 {offsets = [0, 16], sizes = [8, 8], strides = [1, 1]} : vector<8x32xf32> to vector<8x8xf32>
    %113 = vector.extract_strided_slice %46 {offsets = [0, 16], sizes = [8, 8], strides = [1, 1]} : vector<8x32xf32> to vector<8x8xf32>
    %114 = tpu.transpose %113, [1, 0] : vector<8x8xf32> -> vector<8x8xf32>
    %115 = arith.truncf %112 : vector<8x8xf32> to vector<8x8xbf16>
    %116 = arith.truncf %114 : vector<8x8xf32> to vector<8x8xbf16>
    %cst_60 = arith.constant dense<0.000000e+00> : vector<8x8xf32>
    %117 = tpu.matmul %115, %116, %cst_60 {dimension_numbers = #tpu.dot_dimension_numbers<[1], [0], [0], [1], [0, 0, 1, 1], [], []>} : vector<8x8xbf16>, vector<8x8xbf16>, vector<8x8xf32> -> vector<8x8xf32>
    %cst_61 = arith.constant 0.353553385 : f32
    %118 = vector.broadcast %cst_61 : f32 to vector<8x8xf32>
    %119 = arith.mulf %117, %118 : vector<8x8xf32>
    %cst_62 = arith.constant -1.000000e+30 : f32
    %120 = vector.broadcast %cst_62 : f32 to vector<8x8xf32>
    %121 = arith.select %4, %119, %120 : vector<8x8xi1>, vector<8x8xf32>
    %cst_63 = arith.constant dense<0xFF800000> : vector<8xf32>
    %122 = vector.multi_reduction <maximumf>, %121, %cst_63 [1] : vector<8x8xf32> to vector<8xf32>
    %123 = vector.shape_cast %122 : vector<8xf32> to vector<8x1xf32>
    %124 = vector.broadcast %123 : vector<8x1xf32> to vector<8x8xf32>
    %125 = arith.subf %121, %124 : vector<8x8xf32>
    %126 = math.exp %125 : vector<8x8xf32>
    %cst_64 = arith.constant dense<0.000000e+00> : vector<8xf32>
    %127 = vector.multi_reduction <add>, %126, %cst_64 [1] : vector<8x8xf32> to vector<8xf32>
    %128 = vector.shape_cast %127 : vector<8xf32> to vector<8x1xf32>
    %129 = vector.broadcast %128 : vector<8x1xf32> to vector<8x8xf32>
    %130 = arith.divf %126, %129 : vector<8x8xf32>
    %131 = vector.extract_strided_slice %54 {offsets = [0, 16], sizes = [8, 8], strides = [1, 1]} : vector<8x32xf32> to vector<8x8xf32>
    %132 = arith.truncf %130 : vector<8x8xf32> to vector<8x8xbf16>
    %133 = arith.truncf %131 : vector<8x8xf32> to vector<8x8xbf16>
    %cst_65 = arith.constant dense<0.000000e+00> : vector<8x8xf32>
    %134 = tpu.matmul %132, %133, %cst_65 {dimension_numbers = #tpu.dot_dimension_numbers<[1], [0], [0], [1], [0, 0, 1, 1], [], []>} : vector<8x8xbf16>, vector<8x8xbf16>, vector<8x8xf32> -> vector<8x8xf32>
    %c0_66 = arith.constant 0 : index
    %c2_67 = arith.constant 2 : index
    %c0_68 = arith.constant 0 : index
    %c0_69 = arith.constant 0 : index
    %135 = vector.load %arg8[%c0_66, %c2_67, %c0_68, %c0_69] : memref<2x4x8x32xbf16, #tpu.memory_space<vmem>>, vector<1x1x8x32xbf16>
    %136 = vector.shape_cast %135 : vector<1x1x8x32xbf16> to vector<8x32xbf16>
    %137 = arith.truncf %134 : vector<8x8xf32> to vector<8x8xbf16>
    %cst_70 = arith.constant dense<0.000000e+00> : vector<8x32xf32>
    %138 = tpu.matmul %137, %136, %cst_70 {dimension_numbers = #tpu.dot_dimension_numbers<[1], [0], [0], [1], [0, 0, 1, 1], [], []>} : vector<8x8xbf16>, vector<8x32xbf16>, vector<8x32xf32> -> vector<8x32xf32>
    %139 = arith.addf %111, %138 : vector<8x32xf32>
    %140 = vector.extract_strided_slice %38 {offsets = [0, 24], sizes = [8, 8], strides = [1, 1]} : vector<8x32xf32> to vector<8x8xf32>
    %141 = vector.extract_strided_slice %46 {offsets = [0, 24], sizes = [8, 8], strides = [1, 1]} : vector<8x32xf32> to vector<8x8xf32>
    %142 = tpu.transpose %141, [1, 0] : vector<8x8xf32> -> vector<8x8xf32>
    %143 = arith.truncf %140 : vector<8x8xf32> to vector<8x8xbf16>
    %144 = arith.truncf %142 : vector<8x8xf32> to vector<8x8xbf16>
    %cst_71 = arith.constant dense<0.000000e+00> : vector<8x8xf32>
    %145 = tpu.matmul %143, %144, %cst_71 {dimension_numbers = #tpu.dot_dimension_numbers<[1], [0], [0], [1], [0, 0, 1, 1], [], []>} : vector<8x8xbf16>, vector<8x8xbf16>, vector<8x8xf32> -> vector<8x8xf32>
    %cst_72 = arith.constant 0.353553385 : f32
    %146 = vector.broadcast %cst_72 : f32 to vector<8x8xf32>
    %147 = arith.mulf %145, %146 : vector<8x8xf32>
    %cst_73 = arith.constant -1.000000e+30 : f32
    %148 = vector.broadcast %cst_73 : f32 to vector<8x8xf32>
    %149 = arith.select %4, %147, %148 : vector<8x8xi1>, vector<8x8xf32>
    %cst_74 = arith.constant dense<0xFF800000> : vector<8xf32>
    %150 = vector.multi_reduction <maximumf>, %149, %cst_74 [1] : vector<8x8xf32> to vector<8xf32>
    %151 = vector.shape_cast %150 : vector<8xf32> to vector<8x1xf32>
    %152 = vector.broadcast %151 : vector<8x1xf32> to vector<8x8xf32>
    %153 = arith.subf %149, %152 : vector<8x8xf32>
    %154 = math.exp %153 : vector<8x8xf32>
    %cst_75 = arith.constant dense<0.000000e+00> : vector<8xf32>
    %155 = vector.multi_reduction <add>, %154, %cst_75 [1] : vector<8x8xf32> to vector<8xf32>
    %156 = vector.shape_cast %155 : vector<8xf32> to vector<8x1xf32>
    %157 = vector.broadcast %156 : vector<8x1xf32> to vector<8x8xf32>
    %158 = arith.divf %154, %157 : vector<8x8xf32>
    %159 = vector.extract_strided_slice %54 {offsets = [0, 24], sizes = [8, 8], strides = [1, 1]} : vector<8x32xf32> to vector<8x8xf32>
    %160 = arith.truncf %158 : vector<8x8xf32> to vector<8x8xbf16>
    %161 = arith.truncf %159 : vector<8x8xf32> to vector<8x8xbf16>
    %cst_76 = arith.constant dense<0.000000e+00> : vector<8x8xf32>
    %162 = tpu.matmul %160, %161, %cst_76 {dimension_numbers = #tpu.dot_dimension_numbers<[1], [0], [0], [1], [0, 0, 1, 1], [], []>} : vector<8x8xbf16>, vector<8x8xbf16>, vector<8x8xf32> -> vector<8x8xf32>
    %c0_77 = arith.constant 0 : index
    %c3 = arith.constant 3 : index
    %c0_78 = arith.constant 0 : index
    %c0_79 = arith.constant 0 : index
    %163 = vector.load %arg8[%c0_77, %c3, %c0_78, %c0_79] : memref<2x4x8x32xbf16, #tpu.memory_space<vmem>>, vector<1x1x8x32xbf16>
    %164 = vector.shape_cast %163 : vector<1x1x8x32xbf16> to vector<8x32xbf16>
    %165 = arith.truncf %162 : vector<8x8xf32> to vector<8x8xbf16>
    %cst_80 = arith.constant dense<0.000000e+00> : vector<8x32xf32>
    %166 = tpu.matmul %165, %164, %cst_80 {dimension_numbers = #tpu.dot_dimension_numbers<[1], [0], [0], [1], [0, 0, 1, 1], [], []>} : vector<8x8xbf16>, vector<8x32xbf16>, vector<8x32xf32> -> vector<8x32xf32>
    %167 = arith.addf %139, %166 : vector<8x32xf32>
    %c0_81 = arith.constant 0 : index
    %c0_82 = arith.constant 0 : index
    %c0_83 = arith.constant 0 : index
    %168 = vector.load %arg9[%c0_81, %c0_82, %c0_83] : memref<2x1x32xf32, #tpu.memory_space<vmem>>, vector<1x1x32xf32>
    %169 = vector.shape_cast %168 : vector<1x1x32xf32> to vector<1x32xf32>
    %170 = vector.broadcast %169 : vector<1x32xf32> to vector<8x32xf32>
    %171 = arith.addf %167, %170 : vector<8x32xf32>
    %172 = arith.addf %171, %1 : vector<8x32xf32>
    %c0_84 = arith.constant 0 : index
    %c0_85 = arith.constant 0 : index
    %c0_86 = arith.constant 0 : index
    %173 = vector.load %arg4[%c0_84, %c0_85, %c0_86] : memref<2x1x32xf32, #tpu.memory_space<vmem>>, vector<1x1x32xf32>
    %174 = vector.shape_cast %173 : vector<1x1x32xf32> to vector<1x32xf32>
    %c0_87 = arith.constant 0 : index
    %c0_88 = arith.constant 0 : index
    %c0_89 = arith.constant 0 : index
    %175 = vector.load %arg5[%c0_87, %c0_88, %c0_89] : memref<2x1x32xf32, #tpu.memory_space<vmem>>, vector<1x1x32xf32>
    %176 = vector.shape_cast %175 : vector<1x1x32xf32> to vector<1x32xf32>
    %cst_90 = arith.constant dense<0.000000e+00> : vector<8xf32>
    %177 = vector.multi_reduction <add>, %172, %cst_90 [1] : vector<8x32xf32> to vector<8xf32>
    %178 = vector.shape_cast %177 : vector<8xf32> to vector<8x1xf32>
    %cst_91 = arith.constant 3.200000e+01 : f32
    %179 = vector.broadcast %cst_91 : f32 to vector<8x1xf32>
    %180 = arith.divf %178, %179 : vector<8x1xf32>
    %181 = arith.mulf %172, %172 : vector<8x32xf32>
    %cst_92 = arith.constant dense<0.000000e+00> : vector<8xf32>
    %182 = vector.multi_reduction <add>, %181, %cst_92 [1] : vector<8x32xf32> to vector<8xf32>
    %183 = vector.shape_cast %182 : vector<8xf32> to vector<8x1xf32>
    %cst_93 = arith.constant 3.200000e+01 : f32
    %184 = vector.broadcast %cst_93 : f32 to vector<8x1xf32>
    %185 = arith.divf %183, %184 : vector<8x1xf32>
    %186 = arith.mulf %180, %180 : vector<8x1xf32>
    %187 = arith.subf %185, %186 : vector<8x1xf32>
    %188 = vector.broadcast %180 : vector<8x1xf32> to vector<8x32xf32>
    %189 = arith.subf %172, %188 : vector<8x32xf32>
    %cst_94 = arith.constant 9.99999974E-6 : f32
    %190 = vector.broadcast %cst_94 : f32 to vector<8x1xf32>
    %191 = arith.addf %187, %190 : vector<8x1xf32>
    %192 = math.rsqrt %191 : vector<8x1xf32>
    %193 = vector.broadcast %192 : vector<8x1xf32> to vector<8x32xf32>
    %194 = arith.mulf %189, %193 : vector<8x32xf32>
    %195 = vector.broadcast %174 : vector<1x32xf32> to vector<8x32xf32>
    %196 = arith.mulf %194, %195 : vector<8x32xf32>
    %197 = vector.broadcast %176 : vector<1x32xf32> to vector<8x32xf32>
    %198 = arith.addf %196, %197 : vector<8x32xf32>
    %c0_95 = arith.constant 0 : index
    %c0_96 = arith.constant 0 : index
    %c0_97 = arith.constant 0 : index
    %199 = vector.load %arg10[%c0_95, %c0_96, %c0_97] : memref<2x32x64xbf16, #tpu.memory_space<vmem>>, vector<1x32x64xbf16>
    %200 = vector.shape_cast %199 : vector<1x32x64xbf16> to vector<32x64xbf16>
    %201 = arith.truncf %198 : vector<8x32xf32> to vector<8x32xbf16>
    %cst_98 = arith.constant dense<0.000000e+00> : vector<8x64xf32>
    %202 = tpu.matmul %201, %200, %cst_98 {dimension_numbers = #tpu.dot_dimension_numbers<[1], [0], [0], [1], [0, 0, 1, 1], [], []>} : vector<8x32xbf16>, vector<32x64xbf16>, vector<8x64xf32> -> vector<8x64xf32>
    %c0_99 = arith.constant 0 : index
    %c0_100 = arith.constant 0 : index
    %c0_101 = arith.constant 0 : index
    %203 = vector.load %arg11[%c0_99, %c0_100, %c0_101] : memref<2x1x64xf32, #tpu.memory_space<vmem>>, vector<1x1x64xf32>
    %204 = vector.shape_cast %203 : vector<1x1x64xf32> to vector<1x64xf32>
    %205 = vector.broadcast %204 : vector<1x64xf32> to vector<8x64xf32>
    %206 = arith.addf %202, %205 : vector<8x64xf32>
    %cst_102 = arith.constant 5.000000e-01 : f32
    %207 = vector.broadcast %cst_102 : f32 to vector<8x64xf32>
    %208 = arith.mulf %207, %206 : vector<8x64xf32>
    %cst_103 = arith.constant 0.707106769 : f32
    %209 = vector.broadcast %cst_103 : f32 to vector<8x64xf32>
    %210 = arith.mulf %206, %209 : vector<8x64xf32>
    %211 = math.absf %210 : vector<8x64xf32>
    %cst_104 = arith.constant 0.327591091 : f32
    %212 = vector.broadcast %cst_104 : f32 to vector<8x64xf32>
    %213 = arith.mulf %212, %211 : vector<8x64xf32>
    %cst_105 = arith.constant 1.000000e+00 : f32
    %214 = vector.broadcast %cst_105 : f32 to vector<8x64xf32>
    %215 = arith.addf %214, %213 : vector<8x64xf32>
    %cst_106 = arith.constant 1.000000e+00 : f32
    %216 = vector.broadcast %cst_106 : f32 to vector<8x64xf32>
    %217 = arith.divf %216, %215 : vector<8x64xf32>
    %cst_107 = arith.constant 1.06140542 : f32
    %218 = vector.broadcast %cst_107 : f32 to vector<8x64xf32>
    %219 = arith.mulf %218, %217 : vector<8x64xf32>
    %cst_108 = arith.constant -1.45315206 : f32
    %220 = vector.broadcast %cst_108 : f32 to vector<8x64xf32>
    %221 = arith.addf %219, %220 : vector<8x64xf32>
    %222 = arith.mulf %221, %217 : vector<8x64xf32>
    %cst_109 = arith.constant 1.42141378 : f32
    %223 = vector.broadcast %cst_109 : f32 to vector<8x64xf32>
    %224 = arith.addf %222, %223 : vector<8x64xf32>
    %225 = arith.mulf %224, %217 : vector<8x64xf32>
    %cst_110 = arith.constant -0.284496725 : f32
    %226 = vector.broadcast %cst_110 : f32 to vector<8x64xf32>
    %227 = arith.addf %225, %226 : vector<8x64xf32>
    %228 = arith.mulf %227, %217 : vector<8x64xf32>
    %cst_111 = arith.constant 0.254829586 : f32
    %229 = vector.broadcast %cst_111 : f32 to vector<8x64xf32>
    %230 = arith.addf %228, %229 : vector<8x64xf32>
    %231 = arith.mulf %230, %217 : vector<8x64xf32>
    %cst_112 = arith.constant 0.000000e+00 : f32
    %232 = vector.broadcast %cst_112 : f32 to vector<8x64xf32>
    %233 = arith.subf %232, %211 : vector<8x64xf32>
    %234 = arith.mulf %233, %211 : vector<8x64xf32>
    %235 = math.exp %234 : vector<8x64xf32>
    %236 = arith.mulf %231, %235 : vector<8x64xf32>
    %cst_113 = arith.constant 1.000000e+00 : f32
    %237 = vector.broadcast %cst_113 : f32 to vector<8x64xf32>
    %238 = arith.subf %237, %236 : vector<8x64xf32>
    %cst_114 = arith.constant 0.000000e+00 : f32
    %239 = vector.broadcast %cst_114 : f32 to vector<8x64xf32>
    %240 = arith.cmpf olt, %210, %239 : vector<8x64xf32>
    %cst_115 = arith.constant 0.000000e+00 : f32
    %241 = vector.broadcast %cst_115 : f32 to vector<8x64xf32>
    %242 = arith.subf %241, %238 : vector<8x64xf32>
    %243 = arith.select %240, %242, %238 : vector<8x64xi1>, vector<8x64xf32>
    %cst_116 = arith.constant 1.000000e+00 : f32
    %244 = vector.broadcast %cst_116 : f32 to vector<8x64xf32>
    %245 = arith.addf %244, %243 : vector<8x64xf32>
    %246 = arith.mulf %208, %245 : vector<8x64xf32>
    %c0_117 = arith.constant 0 : index
    %c0_118 = arith.constant 0 : index
    %c0_119 = arith.constant 0 : index
    %247 = vector.load %arg12[%c0_117, %c0_118, %c0_119] : memref<2x64x32xbf16, #tpu.memory_space<vmem>>, vector<1x64x32xbf16>
    %248 = vector.shape_cast %247 : vector<1x64x32xbf16> to vector<64x32xbf16>
    %249 = arith.truncf %246 : vector<8x64xf32> to vector<8x64xbf16>
    %cst_120 = arith.constant dense<0.000000e+00> : vector<8x32xf32>
    %250 = tpu.matmul %249, %248, %cst_120 {dimension_numbers = #tpu.dot_dimension_numbers<[1], [0], [0], [1], [0, 0, 1, 1], [], []>} : vector<8x64xbf16>, vector<64x32xbf16>, vector<8x32xf32> -> vector<8x32xf32>
    %c0_121 = arith.constant 0 : index
    %c0_122 = arith.constant 0 : index
    %c0_123 = arith.constant 0 : index
    %251 = vector.load %arg13[%c0_121, %c0_122, %c0_123] : memref<2x1x32xf32, #tpu.memory_space<vmem>>, vector<1x1x32xf32>
    %252 = vector.shape_cast %251 : vector<1x1x32xf32> to vector<1x32xf32>
    %253 = vector.broadcast %252 : vector<1x32xf32> to vector<8x32xf32>
    %254 = arith.addf %250, %253 : vector<8x32xf32>
    %255 = arith.addf %254, %172 : vector<8x32xf32>
    %c1_124 = arith.constant 1 : index
    %c0_125 = arith.constant 0 : index
    %c0_126 = arith.constant 0 : index
    %256 = vector.load %arg2[%c1_124, %c0_125, %c0_126] : memref<2x1x32xf32, #tpu.memory_space<vmem>>, vector<1x1x32xf32>
    %257 = vector.shape_cast %256 : vector<1x1x32xf32> to vector<1x32xf32>
    %c1_127 = arith.constant 1 : index
    %c0_128 = arith.constant 0 : index
    %c0_129 = arith.constant 0 : index
    %258 = vector.load %arg3[%c1_127, %c0_128, %c0_129] : memref<2x1x32xf32, #tpu.memory_space<vmem>>, vector<1x1x32xf32>
    %259 = vector.shape_cast %258 : vector<1x1x32xf32> to vector<1x32xf32>
    %cst_130 = arith.constant dense<0.000000e+00> : vector<8xf32>
    %260 = vector.multi_reduction <add>, %255, %cst_130 [1] : vector<8x32xf32> to vector<8xf32>
    %261 = vector.shape_cast %260 : vector<8xf32> to vector<8x1xf32>
    %cst_131 = arith.constant 3.200000e+01 : f32
    %262 = vector.broadcast %cst_131 : f32 to vector<8x1xf32>
    %263 = arith.divf %261, %262 : vector<8x1xf32>
    %264 = arith.mulf %255, %255 : vector<8x32xf32>
    %cst_132 = arith.constant dense<0.000000e+00> : vector<8xf32>
    %265 = vector.multi_reduction <add>, %264, %cst_132 [1] : vector<8x32xf32> to vector<8xf32>
    %266 = vector.shape_cast %265 : vector<8xf32> to vector<8x1xf32>
    %cst_133 = arith.constant 3.200000e+01 : f32
    %267 = vector.broadcast %cst_133 : f32 to vector<8x1xf32>
    %268 = arith.divf %266, %267 : vector<8x1xf32>
    %269 = arith.mulf %263, %263 : vector<8x1xf32>
    %270 = arith.subf %268, %269 : vector<8x1xf32>
    %271 = vector.broadcast %263 : vector<8x1xf32> to vector<8x32xf32>
    %272 = arith.subf %255, %271 : vector<8x32xf32>
    %cst_134 = arith.constant 9.99999974E-6 : f32
    %273 = vector.broadcast %cst_134 : f32 to vector<8x1xf32>
    %274 = arith.addf %270, %273 : vector<8x1xf32>
    %275 = math.rsqrt %274 : vector<8x1xf32>
    %276 = vector.broadcast %275 : vector<8x1xf32> to vector<8x32xf32>
    %277 = arith.mulf %272, %276 : vector<8x32xf32>
    %278 = vector.broadcast %257 : vector<1x32xf32> to vector<8x32xf32>
    %279 = arith.mulf %277, %278 : vector<8x32xf32>
    %280 = vector.broadcast %259 : vector<1x32xf32> to vector<8x32xf32>
    %281 = arith.addf %279, %280 : vector<8x32xf32>
    %c1_135 = arith.constant 1 : index
    %c0_136 = arith.constant 0 : index
    %c0_137 = arith.constant 0 : index
    %c0_138 = arith.constant 0 : index
    %282 = vector.load %arg6[%c1_135, %c0_136, %c0_137, %c0_138] : memref<2x3x32x32xbf16, #tpu.memory_space<vmem>>, vector<1x1x32x32xbf16>
    %283 = vector.shape_cast %282 : vector<1x1x32x32xbf16> to vector<32x32xbf16>
    %284 = arith.truncf %281 : vector<8x32xf32> to vector<8x32xbf16>
    %cst_139 = arith.constant dense<0.000000e+00> : vector<8x32xf32>
    %285 = tpu.matmul %284, %283, %cst_139 {dimension_numbers = #tpu.dot_dimension_numbers<[1], [0], [0], [1], [0, 0, 1, 1], [], []>} : vector<8x32xbf16>, vector<32x32xbf16>, vector<8x32xf32> -> vector<8x32xf32>
    %c1_140 = arith.constant 1 : index
    %c0_141 = arith.constant 0 : index
    %c0_142 = arith.constant 0 : index
    %c0_143 = arith.constant 0 : index
    %286 = vector.load %arg7[%c1_140, %c0_141, %c0_142, %c0_143] : memref<2x3x1x32xf32, #tpu.memory_space<vmem>>, vector<1x1x1x32xf32>
    %287 = vector.shape_cast %286 : vector<1x1x1x32xf32> to vector<1x32xf32>
    %288 = vector.broadcast %287 : vector<1x32xf32> to vector<8x32xf32>
    %289 = arith.addf %285, %288 : vector<8x32xf32>
    %c1_144 = arith.constant 1 : index
    %c1_145 = arith.constant 1 : index
    %c0_146 = arith.constant 0 : index
    %c0_147 = arith.constant 0 : index
    %290 = vector.load %arg6[%c1_144, %c1_145, %c0_146, %c0_147] : memref<2x3x32x32xbf16, #tpu.memory_space<vmem>>, vector<1x1x32x32xbf16>
    %291 = vector.shape_cast %290 : vector<1x1x32x32xbf16> to vector<32x32xbf16>
    %292 = arith.truncf %281 : vector<8x32xf32> to vector<8x32xbf16>
    %cst_148 = arith.constant dense<0.000000e+00> : vector<8x32xf32>
    %293 = tpu.matmul %292, %291, %cst_148 {dimension_numbers = #tpu.dot_dimension_numbers<[1], [0], [0], [1], [0, 0, 1, 1], [], []>} : vector<8x32xbf16>, vector<32x32xbf16>, vector<8x32xf32> -> vector<8x32xf32>
    %c1_149 = arith.constant 1 : index
    %c1_150 = arith.constant 1 : index
    %c0_151 = arith.constant 0 : index
    %c0_152 = arith.constant 0 : index
    %294 = vector.load %arg7[%c1_149, %c1_150, %c0_151, %c0_152] : memref<2x3x1x32xf32, #tpu.memory_space<vmem>>, vector<1x1x1x32xf32>
    %295 = vector.shape_cast %294 : vector<1x1x1x32xf32> to vector<1x32xf32>
    %296 = vector.broadcast %295 : vector<1x32xf32> to vector<8x32xf32>
    %297 = arith.addf %293, %296 : vector<8x32xf32>
    %c1_153 = arith.constant 1 : index
    %c2_154 = arith.constant 2 : index
    %c0_155 = arith.constant 0 : index
    %c0_156 = arith.constant 0 : index
    %298 = vector.load %arg6[%c1_153, %c2_154, %c0_155, %c0_156] : memref<2x3x32x32xbf16, #tpu.memory_space<vmem>>, vector<1x1x32x32xbf16>
    %299 = vector.shape_cast %298 : vector<1x1x32x32xbf16> to vector<32x32xbf16>
    %300 = arith.truncf %281 : vector<8x32xf32> to vector<8x32xbf16>
    %cst_157 = arith.constant dense<0.000000e+00> : vector<8x32xf32>
    %301 = tpu.matmul %300, %299, %cst_157 {dimension_numbers = #tpu.dot_dimension_numbers<[1], [0], [0], [1], [0, 0, 1, 1], [], []>} : vector<8x32xbf16>, vector<32x32xbf16>, vector<8x32xf32> -> vector<8x32xf32>
    %c1_158 = arith.constant 1 : index
    %c2_159 = arith.constant 2 : index
    %c0_160 = arith.constant 0 : index
    %c0_161 = arith.constant 0 : index
    %302 = vector.load %arg7[%c1_158, %c2_159, %c0_160, %c0_161] : memref<2x3x1x32xf32, #tpu.memory_space<vmem>>, vector<1x1x1x32xf32>
    %303 = vector.shape_cast %302 : vector<1x1x1x32xf32> to vector<1x32xf32>
    %304 = vector.broadcast %303 : vector<1x32xf32> to vector<8x32xf32>
    %305 = arith.addf %301, %304 : vector<8x32xf32>
    %cst_162 = arith.constant 0.000000e+00 : f32
    %306 = vector.broadcast %cst_162 : f32 to vector<8x32xf32>
    %307 = vector.extract_strided_slice %289 {offsets = [0, 0], sizes = [8, 8], strides = [1, 1]} : vector<8x32xf32> to vector<8x8xf32>
    %308 = vector.extract_strided_slice %297 {offsets = [0, 0], sizes = [8, 8], strides = [1, 1]} : vector<8x32xf32> to vector<8x8xf32>
    %309 = tpu.transpose %308, [1, 0] : vector<8x8xf32> -> vector<8x8xf32>
    %310 = arith.truncf %307 : vector<8x8xf32> to vector<8x8xbf16>
    %311 = arith.truncf %309 : vector<8x8xf32> to vector<8x8xbf16>
    %cst_163 = arith.constant dense<0.000000e+00> : vector<8x8xf32>
    %312 = tpu.matmul %310, %311, %cst_163 {dimension_numbers = #tpu.dot_dimension_numbers<[1], [0], [0], [1], [0, 0, 1, 1], [], []>} : vector<8x8xbf16>, vector<8x8xbf16>, vector<8x8xf32> -> vector<8x8xf32>
    %cst_164 = arith.constant 0.353553385 : f32
    %313 = vector.broadcast %cst_164 : f32 to vector<8x8xf32>
    %314 = arith.mulf %312, %313 : vector<8x8xf32>
    %cst_165 = arith.constant -1.000000e+30 : f32
    %315 = vector.broadcast %cst_165 : f32 to vector<8x8xf32>
    %316 = arith.select %4, %314, %315 : vector<8x8xi1>, vector<8x8xf32>
    %cst_166 = arith.constant dense<0xFF800000> : vector<8xf32>
    %317 = vector.multi_reduction <maximumf>, %316, %cst_166 [1] : vector<8x8xf32> to vector<8xf32>
    %318 = vector.shape_cast %317 : vector<8xf32> to vector<8x1xf32>
    %319 = vector.broadcast %318 : vector<8x1xf32> to vector<8x8xf32>
    %320 = arith.subf %316, %319 : vector<8x8xf32>
    %321 = math.exp %320 : vector<8x8xf32>
    %cst_167 = arith.constant dense<0.000000e+00> : vector<8xf32>
    %322 = vector.multi_reduction <add>, %321, %cst_167 [1] : vector<8x8xf32> to vector<8xf32>
    %323 = vector.shape_cast %322 : vector<8xf32> to vector<8x1xf32>
    %324 = vector.broadcast %323 : vector<8x1xf32> to vector<8x8xf32>
    %325 = arith.divf %321, %324 : vector<8x8xf32>
    %326 = vector.extract_strided_slice %305 {offsets = [0, 0], sizes = [8, 8], strides = [1, 1]} : vector<8x32xf32> to vector<8x8xf32>
    %327 = arith.truncf %325 : vector<8x8xf32> to vector<8x8xbf16>
    %328 = arith.truncf %326 : vector<8x8xf32> to vector<8x8xbf16>
    %cst_168 = arith.constant dense<0.000000e+00> : vector<8x8xf32>
    %329 = tpu.matmul %327, %328, %cst_168 {dimension_numbers = #tpu.dot_dimension_numbers<[1], [0], [0], [1], [0, 0, 1, 1], [], []>} : vector<8x8xbf16>, vector<8x8xbf16>, vector<8x8xf32> -> vector<8x8xf32>
    %c1_169 = arith.constant 1 : index
    %c0_170 = arith.constant 0 : index
    %c0_171 = arith.constant 0 : index
    %c0_172 = arith.constant 0 : index
    %330 = vector.load %arg8[%c1_169, %c0_170, %c0_171, %c0_172] : memref<2x4x8x32xbf16, #tpu.memory_space<vmem>>, vector<1x1x8x32xbf16>
    %331 = vector.shape_cast %330 : vector<1x1x8x32xbf16> to vector<8x32xbf16>
    %332 = arith.truncf %329 : vector<8x8xf32> to vector<8x8xbf16>
    %cst_173 = arith.constant dense<0.000000e+00> : vector<8x32xf32>
    %333 = tpu.matmul %332, %331, %cst_173 {dimension_numbers = #tpu.dot_dimension_numbers<[1], [0], [0], [1], [0, 0, 1, 1], [], []>} : vector<8x8xbf16>, vector<8x32xbf16>, vector<8x32xf32> -> vector<8x32xf32>
    %334 = arith.addf %306, %333 : vector<8x32xf32>
    %335 = vector.extract_strided_slice %289 {offsets = [0, 8], sizes = [8, 8], strides = [1, 1]} : vector<8x32xf32> to vector<8x8xf32>
    %336 = vector.extract_strided_slice %297 {offsets = [0, 8], sizes = [8, 8], strides = [1, 1]} : vector<8x32xf32> to vector<8x8xf32>
    %337 = tpu.transpose %336, [1, 0] : vector<8x8xf32> -> vector<8x8xf32>
    %338 = arith.truncf %335 : vector<8x8xf32> to vector<8x8xbf16>
    %339 = arith.truncf %337 : vector<8x8xf32> to vector<8x8xbf16>
    %cst_174 = arith.constant dense<0.000000e+00> : vector<8x8xf32>
    %340 = tpu.matmul %338, %339, %cst_174 {dimension_numbers = #tpu.dot_dimension_numbers<[1], [0], [0], [1], [0, 0, 1, 1], [], []>} : vector<8x8xbf16>, vector<8x8xbf16>, vector<8x8xf32> -> vector<8x8xf32>
    %cst_175 = arith.constant 0.353553385 : f32
    %341 = vector.broadcast %cst_175 : f32 to vector<8x8xf32>
    %342 = arith.mulf %340, %341 : vector<8x8xf32>
    %cst_176 = arith.constant -1.000000e+30 : f32
    %343 = vector.broadcast %cst_176 : f32 to vector<8x8xf32>
    %344 = arith.select %4, %342, %343 : vector<8x8xi1>, vector<8x8xf32>
    %cst_177 = arith.constant dense<0xFF800000> : vector<8xf32>
    %345 = vector.multi_reduction <maximumf>, %344, %cst_177 [1] : vector<8x8xf32> to vector<8xf32>
    %346 = vector.shape_cast %345 : vector<8xf32> to vector<8x1xf32>
    %347 = vector.broadcast %346 : vector<8x1xf32> to vector<8x8xf32>
    %348 = arith.subf %344, %347 : vector<8x8xf32>
    %349 = math.exp %348 : vector<8x8xf32>
    %cst_178 = arith.constant dense<0.000000e+00> : vector<8xf32>
    %350 = vector.multi_reduction <add>, %349, %cst_178 [1] : vector<8x8xf32> to vector<8xf32>
    %351 = vector.shape_cast %350 : vector<8xf32> to vector<8x1xf32>
    %352 = vector.broadcast %351 : vector<8x1xf32> to vector<8x8xf32>
    %353 = arith.divf %349, %352 : vector<8x8xf32>
    %354 = vector.extract_strided_slice %305 {offsets = [0, 8], sizes = [8, 8], strides = [1, 1]} : vector<8x32xf32> to vector<8x8xf32>
    %355 = arith.truncf %353 : vector<8x8xf32> to vector<8x8xbf16>
    %356 = arith.truncf %354 : vector<8x8xf32> to vector<8x8xbf16>
    %cst_179 = arith.constant dense<0.000000e+00> : vector<8x8xf32>
    %357 = tpu.matmul %355, %356, %cst_179 {dimension_numbers = #tpu.dot_dimension_numbers<[1], [0], [0], [1], [0, 0, 1, 1], [], []>} : vector<8x8xbf16>, vector<8x8xbf16>, vector<8x8xf32> -> vector<8x8xf32>
    %c1_180 = arith.constant 1 : index
    %c1_181 = arith.constant 1 : index
    %c0_182 = arith.constant 0 : index
    %c0_183 = arith.constant 0 : index
    %358 = vector.load %arg8[%c1_180, %c1_181, %c0_182, %c0_183] : memref<2x4x8x32xbf16, #tpu.memory_space<vmem>>, vector<1x1x8x32xbf16>
    %359 = vector.shape_cast %358 : vector<1x1x8x32xbf16> to vector<8x32xbf16>
    %360 = arith.truncf %357 : vector<8x8xf32> to vector<8x8xbf16>
    %cst_184 = arith.constant dense<0.000000e+00> : vector<8x32xf32>
    %361 = tpu.matmul %360, %359, %cst_184 {dimension_numbers = #tpu.dot_dimension_numbers<[1], [0], [0], [1], [0, 0, 1, 1], [], []>} : vector<8x8xbf16>, vector<8x32xbf16>, vector<8x32xf32> -> vector<8x32xf32>
    %362 = arith.addf %334, %361 : vector<8x32xf32>
    %363 = vector.extract_strided_slice %289 {offsets = [0, 16], sizes = [8, 8], strides = [1, 1]} : vector<8x32xf32> to vector<8x8xf32>
    %364 = vector.extract_strided_slice %297 {offsets = [0, 16], sizes = [8, 8], strides = [1, 1]} : vector<8x32xf32> to vector<8x8xf32>
    %365 = tpu.transpose %364, [1, 0] : vector<8x8xf32> -> vector<8x8xf32>
    %366 = arith.truncf %363 : vector<8x8xf32> to vector<8x8xbf16>
    %367 = arith.truncf %365 : vector<8x8xf32> to vector<8x8xbf16>
    %cst_185 = arith.constant dense<0.000000e+00> : vector<8x8xf32>
    %368 = tpu.matmul %366, %367, %cst_185 {dimension_numbers = #tpu.dot_dimension_numbers<[1], [0], [0], [1], [0, 0, 1, 1], [], []>} : vector<8x8xbf16>, vector<8x8xbf16>, vector<8x8xf32> -> vector<8x8xf32>
    %cst_186 = arith.constant 0.353553385 : f32
    %369 = vector.broadcast %cst_186 : f32 to vector<8x8xf32>
    %370 = arith.mulf %368, %369 : vector<8x8xf32>
    %cst_187 = arith.constant -1.000000e+30 : f32
    %371 = vector.broadcast %cst_187 : f32 to vector<8x8xf32>
    %372 = arith.select %4, %370, %371 : vector<8x8xi1>, vector<8x8xf32>
    %cst_188 = arith.constant dense<0xFF800000> : vector<8xf32>
    %373 = vector.multi_reduction <maximumf>, %372, %cst_188 [1] : vector<8x8xf32> to vector<8xf32>
    %374 = vector.shape_cast %373 : vector<8xf32> to vector<8x1xf32>
    %375 = vector.broadcast %374 : vector<8x1xf32> to vector<8x8xf32>
    %376 = arith.subf %372, %375 : vector<8x8xf32>
    %377 = math.exp %376 : vector<8x8xf32>
    %cst_189 = arith.constant dense<0.000000e+00> : vector<8xf32>
    %378 = vector.multi_reduction <add>, %377, %cst_189 [1] : vector<8x8xf32> to vector<8xf32>
    %379 = vector.shape_cast %378 : vector<8xf32> to vector<8x1xf32>
    %380 = vector.broadcast %379 : vector<8x1xf32> to vector<8x8xf32>
    %381 = arith.divf %377, %380 : vector<8x8xf32>
    %382 = vector.extract_strided_slice %305 {offsets = [0, 16], sizes = [8, 8], strides = [1, 1]} : vector<8x32xf32> to vector<8x8xf32>
    %383 = arith.truncf %381 : vector<8x8xf32> to vector<8x8xbf16>
    %384 = arith.truncf %382 : vector<8x8xf32> to vector<8x8xbf16>
    %cst_190 = arith.constant dense<0.000000e+00> : vector<8x8xf32>
    %385 = tpu.matmul %383, %384, %cst_190 {dimension_numbers = #tpu.dot_dimension_numbers<[1], [0], [0], [1], [0, 0, 1, 1], [], []>} : vector<8x8xbf16>, vector<8x8xbf16>, vector<8x8xf32> -> vector<8x8xf32>
    %c1_191 = arith.constant 1 : index
    %c2_192 = arith.constant 2 : index
    %c0_193 = arith.constant 0 : index
    %c0_194 = arith.constant 0 : index
    %386 = vector.load %arg8[%c1_191, %c2_192, %c0_193, %c0_194] : memref<2x4x8x32xbf16, #tpu.memory_space<vmem>>, vector<1x1x8x32xbf16>
    %387 = vector.shape_cast %386 : vector<1x1x8x32xbf16> to vector<8x32xbf16>
    %388 = arith.truncf %385 : vector<8x8xf32> to vector<8x8xbf16>
    %cst_195 = arith.constant dense<0.000000e+00> : vector<8x32xf32>
    %389 = tpu.matmul %388, %387, %cst_195 {dimension_numbers = #tpu.dot_dimension_numbers<[1], [0], [0], [1], [0, 0, 1, 1], [], []>} : vector<8x8xbf16>, vector<8x32xbf16>, vector<8x32xf32> -> vector<8x32xf32>
    %390 = arith.addf %362, %389 : vector<8x32xf32>
    %391 = vector.extract_strided_slice %289 {offsets = [0, 24], sizes = [8, 8], strides = [1, 1]} : vector<8x32xf32> to vector<8x8xf32>
    %392 = vector.extract_strided_slice %297 {offsets = [0, 24], sizes = [8, 8], strides = [1, 1]} : vector<8x32xf32> to vector<8x8xf32>
    %393 = tpu.transpose %392, [1, 0] : vector<8x8xf32> -> vector<8x8xf32>
    %394 = arith.truncf %391 : vector<8x8xf32> to vector<8x8xbf16>
    %395 = arith.truncf %393 : vector<8x8xf32> to vector<8x8xbf16>
    %cst_196 = arith.constant dense<0.000000e+00> : vector<8x8xf32>
    %396 = tpu.matmul %394, %395, %cst_196 {dimension_numbers = #tpu.dot_dimension_numbers<[1], [0], [0], [1], [0, 0, 1, 1], [], []>} : vector<8x8xbf16>, vector<8x8xbf16>, vector<8x8xf32> -> vector<8x8xf32>
    %cst_197 = arith.constant 0.353553385 : f32
    %397 = vector.broadcast %cst_197 : f32 to vector<8x8xf32>
    %398 = arith.mulf %396, %397 : vector<8x8xf32>
    %cst_198 = arith.constant -1.000000e+30 : f32
    %399 = vector.broadcast %cst_198 : f32 to vector<8x8xf32>
    %400 = arith.select %4, %398, %399 : vector<8x8xi1>, vector<8x8xf32>
    %cst_199 = arith.constant dense<0xFF800000> : vector<8xf32>
    %401 = vector.multi_reduction <maximumf>, %400, %cst_199 [1] : vector<8x8xf32> to vector<8xf32>
    %402 = vector.shape_cast %401 : vector<8xf32> to vector<8x1xf32>
    %403 = vector.broadcast %402 : vector<8x1xf32> to vector<8x8xf32>
    %404 = arith.subf %400, %403 : vector<8x8xf32>
    %405 = math.exp %404 : vector<8x8xf32>
    %cst_200 = arith.constant dense<0.000000e+00> : vector<8xf32>
    %406 = vector.multi_reduction <add>, %405, %cst_200 [1] : vector<8x8xf32> to vector<8xf32>
    %407 = vector.shape_cast %406 : vector<8xf32> to vector<8x1xf32>
    %408 = vector.broadcast %407 : vector<8x1xf32> to vector<8x8xf32>
    %409 = arith.divf %405, %408 : vector<8x8xf32>
    %410 = vector.extract_strided_slice %305 {offsets = [0, 24], sizes = [8, 8], strides = [1, 1]} : vector<8x32xf32> to vector<8x8xf32>
    %411 = arith.truncf %409 : vector<8x8xf32> to vector<8x8xbf16>
    %412 = arith.truncf %410 : vector<8x8xf32> to vector<8x8xbf16>
    %cst_201 = arith.constant dense<0.000000e+00> : vector<8x8xf32>
    %413 = tpu.matmul %411, %412, %cst_201 {dimension_numbers = #tpu.dot_dimension_numbers<[1], [0], [0], [1], [0, 0, 1, 1], [], []>} : vector<8x8xbf16>, vector<8x8xbf16>, vector<8x8xf32> -> vector<8x8xf32>
    %c1_202 = arith.constant 1 : index
    %c3_203 = arith.constant 3 : index
    %c0_204 = arith.constant 0 : index
    %c0_205 = arith.constant 0 : index
    %414 = vector.load %arg8[%c1_202, %c3_203, %c0_204, %c0_205] : memref<2x4x8x32xbf16, #tpu.memory_space<vmem>>, vector<1x1x8x32xbf16>
    %415 = vector.shape_cast %414 : vector<1x1x8x32xbf16> to vector<8x32xbf16>
    %416 = arith.truncf %413 : vector<8x8xf32> to vector<8x8xbf16>
    %cst_206 = arith.constant dense<0.000000e+00> : vector<8x32xf32>
    %417 = tpu.matmul %416, %415, %cst_206 {dimension_numbers = #tpu.dot_dimension_numbers<[1], [0], [0], [1], [0, 0, 1, 1], [], []>} : vector<8x8xbf16>, vector<8x32xbf16>, vector<8x32xf32> -> vector<8x32xf32>
    %418 = arith.addf %390, %417 : vector<8x32xf32>
    %c1_207 = arith.constant 1 : index
    %c0_208 = arith.constant 0 : index
    %c0_209 = arith.constant 0 : index
    %419 = vector.load %arg9[%c1_207, %c0_208, %c0_209] : memref<2x1x32xf32, #tpu.memory_space<vmem>>, vector<1x1x32xf32>
    %420 = vector.shape_cast %419 : vector<1x1x32xf32> to vector<1x32xf32>
    %421 = vector.broadcast %420 : vector<1x32xf32> to vector<8x32xf32>
    %422 = arith.addf %418, %421 : vector<8x32xf32>
    %423 = arith.addf %422, %255 : vector<8x32xf32>
    %c1_210 = arith.constant 1 : index
    %c0_211 = arith.constant 0 : index
    %c0_212 = arith.constant 0 : index
    %424 = vector.load %arg4[%c1_210, %c0_211, %c0_212] : memref<2x1x32xf32, #tpu.memory_space<vmem>>, vector<1x1x32xf32>
    %425 = vector.shape_cast %424 : vector<1x1x32xf32> to vector<1x32xf32>
    %c1_213 = arith.constant 1 : index
    %c0_214 = arith.constant 0 : index
    %c0_215 = arith.constant 0 : index
    %426 = vector.load %arg5[%c1_213, %c0_214, %c0_215] : memref<2x1x32xf32, #tpu.memory_space<vmem>>, vector<1x1x32xf32>
    %427 = vector.shape_cast %426 : vector<1x1x32xf32> to vector<1x32xf32>
    %cst_216 = arith.constant dense<0.000000e+00> : vector<8xf32>
    %428 = vector.multi_reduction <add>, %423, %cst_216 [1] : vector<8x32xf32> to vector<8xf32>
    %429 = vector.shape_cast %428 : vector<8xf32> to vector<8x1xf32>
    %cst_217 = arith.constant 3.200000e+01 : f32
    %430 = vector.broadcast %cst_217 : f32 to vector<8x1xf32>
    %431 = arith.divf %429, %430 : vector<8x1xf32>
    %432 = arith.mulf %423, %423 : vector<8x32xf32>
    %cst_218 = arith.constant dense<0.000000e+00> : vector<8xf32>
    %433 = vector.multi_reduction <add>, %432, %cst_218 [1] : vector<8x32xf32> to vector<8xf32>
    %434 = vector.shape_cast %433 : vector<8xf32> to vector<8x1xf32>
    %cst_219 = arith.constant 3.200000e+01 : f32
    %435 = vector.broadcast %cst_219 : f32 to vector<8x1xf32>
    %436 = arith.divf %434, %435 : vector<8x1xf32>
    %437 = arith.mulf %431, %431 : vector<8x1xf32>
    %438 = arith.subf %436, %437 : vector<8x1xf32>
    %439 = vector.broadcast %431 : vector<8x1xf32> to vector<8x32xf32>
    %440 = arith.subf %423, %439 : vector<8x32xf32>
    %cst_220 = arith.constant 9.99999974E-6 : f32
    %441 = vector.broadcast %cst_220 : f32 to vector<8x1xf32>
    %442 = arith.addf %438, %441 : vector<8x1xf32>
    %443 = math.rsqrt %442 : vector<8x1xf32>
    %444 = vector.broadcast %443 : vector<8x1xf32> to vector<8x32xf32>
    %445 = arith.mulf %440, %444 : vector<8x32xf32>
    %446 = vector.broadcast %425 : vector<1x32xf32> to vector<8x32xf32>
    %447 = arith.mulf %445, %446 : vector<8x32xf32>
    %448 = vector.broadcast %427 : vector<1x32xf32> to vector<8x32xf32>
    %449 = arith.addf %447, %448 : vector<8x32xf32>
    %c1_221 = arith.constant 1 : index
    %c0_222 = arith.constant 0 : index
    %c0_223 = arith.constant 0 : index
    %450 = vector.load %arg10[%c1_221, %c0_222, %c0_223] : memref<2x32x64xbf16, #tpu.memory_space<vmem>>, vector<1x32x64xbf16>
    %451 = vector.shape_cast %450 : vector<1x32x64xbf16> to vector<32x64xbf16>
    %452 = arith.truncf %449 : vector<8x32xf32> to vector<8x32xbf16>
    %cst_224 = arith.constant dense<0.000000e+00> : vector<8x64xf32>
    %453 = tpu.matmul %452, %451, %cst_224 {dimension_numbers = #tpu.dot_dimension_numbers<[1], [0], [0], [1], [0, 0, 1, 1], [], []>} : vector<8x32xbf16>, vector<32x64xbf16>, vector<8x64xf32> -> vector<8x64xf32>
    %c1_225 = arith.constant 1 : index
    %c0_226 = arith.constant 0 : index
    %c0_227 = arith.constant 0 : index
    %454 = vector.load %arg11[%c1_225, %c0_226, %c0_227] : memref<2x1x64xf32, #tpu.memory_space<vmem>>, vector<1x1x64xf32>
    %455 = vector.shape_cast %454 : vector<1x1x64xf32> to vector<1x64xf32>
    %456 = vector.broadcast %455 : vector<1x64xf32> to vector<8x64xf32>
    %457 = arith.addf %453, %456 : vector<8x64xf32>
    %cst_228 = arith.constant 5.000000e-01 : f32
    %458 = vector.broadcast %cst_228 : f32 to vector<8x64xf32>
    %459 = arith.mulf %458, %457 : vector<8x64xf32>
    %cst_229 = arith.constant 0.707106769 : f32
    %460 = vector.broadcast %cst_229 : f32 to vector<8x64xf32>
    %461 = arith.mulf %457, %460 : vector<8x64xf32>
    %462 = math.absf %461 : vector<8x64xf32>
    %cst_230 = arith.constant 0.327591091 : f32
    %463 = vector.broadcast %cst_230 : f32 to vector<8x64xf32>
    %464 = arith.mulf %463, %462 : vector<8x64xf32>
    %cst_231 = arith.constant 1.000000e+00 : f32
    %465 = vector.broadcast %cst_231 : f32 to vector<8x64xf32>
    %466 = arith.addf %465, %464 : vector<8x64xf32>
    %cst_232 = arith.constant 1.000000e+00 : f32
    %467 = vector.broadcast %cst_232 : f32 to vector<8x64xf32>
    %468 = arith.divf %467, %466 : vector<8x64xf32>
    %cst_233 = arith.constant 1.06140542 : f32
    %469 = vector.broadcast %cst_233 : f32 to vector<8x64xf32>
    %470 = arith.mulf %469, %468 : vector<8x64xf32>
    %cst_234 = arith.constant -1.45315206 : f32
    %471 = vector.broadcast %cst_234 : f32 to vector<8x64xf32>
    %472 = arith.addf %470, %471 : vector<8x64xf32>
    %473 = arith.mulf %472, %468 : vector<8x64xf32>
    %cst_235 = arith.constant 1.42141378 : f32
    %474 = vector.broadcast %cst_235 : f32 to vector<8x64xf32>
    %475 = arith.addf %473, %474 : vector<8x64xf32>
    %476 = arith.mulf %475, %468 : vector<8x64xf32>
    %cst_236 = arith.constant -0.284496725 : f32
    %477 = vector.broadcast %cst_236 : f32 to vector<8x64xf32>
    %478 = arith.addf %476, %477 : vector<8x64xf32>
    %479 = arith.mulf %478, %468 : vector<8x64xf32>
    %cst_237 = arith.constant 0.254829586 : f32
    %480 = vector.broadcast %cst_237 : f32 to vector<8x64xf32>
    %481 = arith.addf %479, %480 : vector<8x64xf32>
    %482 = arith.mulf %481, %468 : vector<8x64xf32>
    %cst_238 = arith.constant 0.000000e+00 : f32
    %483 = vector.broadcast %cst_238 : f32 to vector<8x64xf32>
    %484 = arith.subf %483, %462 : vector<8x64xf32>
    %485 = arith.mulf %484, %462 : vector<8x64xf32>
    %486 = math.exp %485 : vector<8x64xf32>
    %487 = arith.mulf %482, %486 : vector<8x64xf32>
    %cst_239 = arith.constant 1.000000e+00 : f32
    %488 = vector.broadcast %cst_239 : f32 to vector<8x64xf32>
    %489 = arith.subf %488, %487 : vector<8x64xf32>
    %cst_240 = arith.constant 0.000000e+00 : f32
    %490 = vector.broadcast %cst_240 : f32 to vector<8x64xf32>
    %491 = arith.cmpf olt, %461, %490 : vector<8x64xf32>
    %cst_241 = arith.constant 0.000000e+00 : f32
    %492 = vector.broadcast %cst_241 : f32 to vector<8x64xf32>
    %493 = arith.subf %492, %489 : vector<8x64xf32>
    %494 = arith.select %491, %493, %489 : vector<8x64xi1>, vector<8x64xf32>
    %cst_242 = arith.constant 1.000000e+00 : f32
    %495 = vector.broadcast %cst_242 : f32 to vector<8x64xf32>
    %496 = arith.addf %495, %494 : vector<8x64xf32>
    %497 = arith.mulf %459, %496 : vector<8x64xf32>
    %c1_243 = arith.constant 1 : index
    %c0_244 = arith.constant 0 : index
    %c0_245 = arith.constant 0 : index
    %498 = vector.load %arg12[%c1_243, %c0_244, %c0_245] : memref<2x64x32xbf16, #tpu.memory_space<vmem>>, vector<1x64x32xbf16>
    %499 = vector.shape_cast %498 : vector<1x64x32xbf16> to vector<64x32xbf16>
    %500 = arith.truncf %497 : vector<8x64xf32> to vector<8x64xbf16>
    %cst_246 = arith.constant dense<0.000000e+00> : vector<8x32xf32>
    %501 = tpu.matmul %500, %499, %cst_246 {dimension_numbers = #tpu.dot_dimension_numbers<[1], [0], [0], [1], [0, 0, 1, 1], [], []>} : vector<8x64xbf16>, vector<64x32xbf16>, vector<8x32xf32> -> vector<8x32xf32>
    %c1_247 = arith.constant 1 : index
    %c0_248 = arith.constant 0 : index
    %c0_249 = arith.constant 0 : index
    %502 = vector.load %arg13[%c1_247, %c0_248, %c0_249] : memref<2x1x32xf32, #tpu.memory_space<vmem>>, vector<1x1x32xf32>
    %503 = vector.shape_cast %502 : vector<1x1x32xf32> to vector<1x32xf32>
    %504 = vector.broadcast %503 : vector<1x32xf32> to vector<8x32xf32>
    %505 = arith.addf %501, %504 : vector<8x32xf32>
    %506 = arith.addf %505, %423 : vector<8x32xf32>
    %c0_250 = arith.constant 0 : index
    %c0_251 = arith.constant 0 : index
    %507 = vector.load %arg14[%c0_250, %c0_251] : memref<1x32xf32, #tpu.memory_space<vmem>>, vector<1x32xf32>
    %c0_252 = arith.constant 0 : index
    %c0_253 = arith.constant 0 : index
    %508 = vector.load %arg15[%c0_252, %c0_253] : memref<1x32xf32, #tpu.memory_space<vmem>>, vector<1x32xf32>
    %cst_254 = arith.constant dense<0.000000e+00> : vector<8xf32>
    %509 = vector.multi_reduction <add>, %506, %cst_254 [1] : vector<8x32xf32> to vector<8xf32>
    %510 = vector.shape_cast %509 : vector<8xf32> to vector<8x1xf32>
    %cst_255 = arith.constant 3.200000e+01 : f32
    %511 = vector.broadcast %cst_255 : f32 to vector<8x1xf32>
    %512 = arith.divf %510, %511 : vector<8x1xf32>
    %513 = arith.mulf %506, %506 : vector<8x32xf32>
    %cst_256 = arith.constant dense<0.000000e+00> : vector<8xf32>
    %514 = vector.multi_reduction <add>, %513, %cst_256 [1] : vector<8x32xf32> to vector<8xf32>
    %515 = vector.shape_cast %514 : vector<8xf32> to vector<8x1xf32>
    %cst_257 = arith.constant 3.200000e+01 : f32
    %516 = vector.broadcast %cst_257 : f32 to vector<8x1xf32>
    %517 = arith.divf %515, %516 : vector<8x1xf32>
    %518 = arith.mulf %512, %512 : vector<8x1xf32>
    %519 = arith.subf %517, %518 : vector<8x1xf32>
    %520 = vector.broadcast %512 : vector<8x1xf32> to vector<8x32xf32>
    %521 = arith.subf %506, %520 : vector<8x32xf32>
    %cst_258 = arith.constant 9.99999974E-6 : f32
    %522 = vector.broadcast %cst_258 : f32 to vector<8x1xf32>
    %523 = arith.addf %519, %522 : vector<8x1xf32>
    %524 = math.rsqrt %523 : vector<8x1xf32>
    %525 = vector.broadcast %524 : vector<8x1xf32> to vector<8x32xf32>
    %526 = arith.mulf %521, %525 : vector<8x32xf32>
    %527 = vector.broadcast %507 : vector<1x32xf32> to vector<8x32xf32>
    %528 = arith.mulf %526, %527 : vector<8x32xf32>
    %529 = vector.broadcast %508 : vector<1x32xf32> to vector<8x32xf32>
    %530 = arith.addf %528, %529 : vector<8x32xf32>
    %c0_259 = arith.constant 0 : index
    %c0_260 = arith.constant 0 : index
    %531 = vector.load %arg16[%c0_259, %c0_260] : memref<32x128xbf16, #tpu.memory_space<vmem>>, vector<32x128xbf16>
    %532 = arith.truncf %530 : vector<8x32xf32> to vector<8x32xbf16>
    %cst_261 = arith.constant dense<0.000000e+00> : vector<8x128xf32>
    %533 = tpu.matmul %532, %531, %cst_261 {dimension_numbers = #tpu.dot_dimension_numbers<[1], [0], [0], [1], [0, 0, 1, 1], [], []>} : vector<8x32xbf16>, vector<32x128xbf16>, vector<8x128xf32> -> vector<8x128xf32>
    %c0_262 = arith.constant 0 : index
    %c0_263 = arith.constant 0 : index
    %534 = vector.load %arg17[%c0_262, %c0_263] : memref<1x128xf32, #tpu.memory_space<vmem>>, vector<1x128xf32>
    %535 = vector.broadcast %534 : vector<1x128xf32> to vector<8x128xf32>
    %536 = arith.addf %533, %535 : vector<8x128xf32>
    %c0_264 = arith.constant 0 : index
    %c0_265 = arith.constant 0 : index
    %c0_266 = arith.constant 0 : index
    %537 = vector.load %arg18[%c0_264, %c0_265, %c0_266] : memref<1x8x128xf32, #tpu.memory_space<vmem>>, vector<1x8x128xf32>
    %538 = vector.shape_cast %537 : vector<1x8x128xf32> to vector<8x128xf32>
    %539 = vector.shape_cast %536 : vector<8x128xf32> to vector<1x8x128xf32>
    tpu.vector_store %arg18[%c0_264, %c0_265, %c0_266], %539 {strides = array<i32>} : memref<1x8x128xf32, #tpu.memory_space<vmem>>, vector<1x8x128xf32>,
    return
  }
  func.func @transform_0(%arg0: i32) -> (i32, i32, i32) {
    %c0_i32 = arith.constant 0 : i32
    %c0_i32_0 = arith.constant 0 : i32
    %c0_i32_1 = arith.constant 0 : i32
    return %arg0, %c0_i32, %c0_i32_0 : i32, i32, i32
  }
  func.func @transform_1(%arg0: i32) -> (i32, i32, i32) {
    %c0_i32 = arith.constant 0 : i32
    %c0_i32_0 = arith.constant 0 : i32
    %c0_i32_1 = arith.constant 0 : i32
    %c0_i32_2 = arith.constant 0 : i32
    return %c0_i32, %c0_i32_0, %c0_i32_1 : i32, i32, i32
  }
  func.func @transform_2(%arg0: i32) -> (i32, i32, i32) {
    %c0_i32 = arith.constant 0 : i32
    %c0_i32_0 = arith.constant 0 : i32
    %c0_i32_1 = arith.constant 0 : i32
    %c0_i32_2 = arith.constant 0 : i32
    return %c0_i32, %c0_i32_0, %c0_i32_1 : i32, i32, i32
  }
  func.func @transform_3(%arg0: i32) -> (i32, i32, i32) {
    %c0_i32 = arith.constant 0 : i32
    %c0_i32_0 = arith.constant 0 : i32
    %c0_i32_1 = arith.constant 0 : i32
    %c0_i32_2 = arith.constant 0 : i32
    return %c0_i32, %c0_i32_0, %c0_i32_1 : i32, i32, i32
  }
  func.func @transform_4(%arg0: i32) -> (i32, i32, i32) {
    %c0_i32 = arith.constant 0 : i32
    %c0_i32_0 = arith.constant 0 : i32
    %c0_i32_1 = arith.constant 0 : i32
    %c0_i32_2 = arith.constant 0 : i32
    return %c0_i32, %c0_i32_0, %c0_i32_1 : i32, i32, i32
  }
  func.func @transform_5(%arg0: i32) -> (i32, i32, i32, i32) {
    %c0_i32 = arith.constant 0 : i32
    %c0_i32_0 = arith.constant 0 : i32
    %c0_i32_1 = arith.constant 0 : i32
    %c0_i32_2 = arith.constant 0 : i32
    %c0_i32_3 = arith.constant 0 : i32
    return %c0_i32, %c0_i32_0, %c0_i32_1, %c0_i32_2 : i32, i32, i32, i32
  }
  func.func @transform_6(%arg0: i32) -> (i32, i32, i32, i32) {
    %c0_i32 = arith.constant 0 : i32
    %c0_i32_0 = arith.constant 0 : i32
    %c0_i32_1 = arith.constant 0 : i32
    %c0_i32_2 = arith.constant 0 : i32
    %c0_i32_3 = arith.constant 0 : i32
    return %c0_i32, %c0_i32_0, %c0_i32_1, %c0_i32_2 : i32, i32, i32, i32
  }
  func.func @transform_7(%arg0: i32) -> (i32, i32, i32, i32) {
    %c0_i32 = arith.constant 0 : i32
    %c0_i32_0 = arith.constant 0 : i32
    %c0_i32_1 = arith.constant 0 : i32
    %c0_i32_2 = arith.constant 0 : i32
    %c0_i32_3 = arith.constant 0 : i32
    return %c0_i32, %c0_i32_0, %c0_i32_1, %c0_i32_2 : i32, i32, i32, i32
  }
  func.func @transform_8(%arg0: i32) -> (i32, i32, i32) {
    %c0_i32 = arith.constant 0 : i32
    %c0_i32_0 = arith.constant 0 : i32
    %c0_i32_1 = arith.constant 0 : i32
    %c0_i32_2 = arith.constant 0 : i32
    return %c0_i32, %c0_i32_0, %c0_i32_1 : i32, i32, i32
  }
  func.func @transform_9(%arg0: i32) -> (i32, i32, i32) {
    %c0_i32 = arith.constant 0 : i32
    %c0_i32_0 = arith.constant 0 : i32
    %c0_i32_1 = arith.constant 0 : i32
    %c0_i32_2 = arith.constant 0 : i32
    return %c0_i32, %c0_i32_0, %c0_i32_1 : i32, i32, i32
  }
  func.func @transform_10(%arg0: i32) -> (i32, i32, i32) {
    %c0_i32 = arith.constant 0 : i32
    %c0_i32_0 = arith.constant 0 : i32
    %c0_i32_1 = arith.constant 0 : i32
    %c0_i32_2 = arith.constant 0 : i32
    return %c0_i32, %c0_i32_0, %c0_i32_1 : i32, i32, i32
  }
  func.func @transform_11(%arg0: i32) -> (i32, i32, i32) {
    %c0_i32 = arith.constant 0 : i32
    %c0_i32_0 = arith.constant 0 : i32
    %c0_i32_1 = arith.constant 0 : i32
    %c0_i32_2 = arith.constant 0 : i32
    return %c0_i32, %c0_i32_0, %c0_i32_1 : i32, i32, i32
  }
  func.func @transform_12(%arg0: i32) -> (i32, i32, i32) {
    %c0_i32 = arith.constant 0 : i32
    %c0_i32_0 = arith.constant 0 : i32
    %c0_i32_1 = arith.constant 0 : i32
    %c0_i32_2 = arith.constant 0 : i32
    return %c0_i32, %c0_i32_0, %c0_i32_1 : i32, i32, i32
  }
  func.func @transform_13(%arg0: i32) -> (i32, i32) {
    %c0_i32 = arith.constant 0 : i32
    %c0_i32_0 = arith.constant 0 : i32
    %c0_i32_1 = arith.constant 0 : i32
    return %c0_i32, %c0_i32_0 : i32, i32
  }
  func.func @transform_14(%arg0: i32) -> (i32, i32) {
    %c0_i32 = arith.constant 0 : i32
    %c0_i32_0 = arith.constant 0 : i32
    %c0_i32_1 = arith.constant 0 : i32
    return %c0_i32, %c0_i32_0 : i32, i32
  }
  func.func @transform_15(%arg0: i32) -> (i32, i32) {
    %c0_i32 = arith.constant 0 : i32
    %c0_i32_0 = arith.constant 0 : i32
    %c0_i32_1 = arith.constant 0 : i32
    return %c0_i32, %c0_i32_0 : i32, i32
  }
  func.func @transform_16(%arg0: i32) -> (i32, i32) {
    %c0_i32 = arith.constant 0 : i32
    %c0_i32_0 = arith.constant 0 : i32
    %c0_i32_1 = arith.constant 0 : i32
    return %c0_i32, %c0_i32_0 : i32, i32
  }
  func.func @transform_17(%arg0: i32) -> (i32, i32, i32) {
    %c0_i32 = arith.constant 0 : i32
    %c0_i32_0 = arith.constant 0 : i32
    %c0_i32_1 = arith.constant 0 : i32
    return %arg0, %c0_i32, %c0_i32_0 : i32, i32, i32
  }
}

</mosaic_0001>

<bundles_post_ra>
// kernel: transformer_lm_forward.1
= control target key start
LH: loop header
LB: loop body
LE: loop exit
PB: predicated region body
PF: predicated region fallthrough
CT: control target
= control target key end

     0   :  { %s4524_s0 = inlined_call_operand.vmem [shape: f32[2,8,32], index: 0, kind: input, shape index: {}]   ;;  %s4525_s1 = inlined_call_operand.vmem [shape: f32[2,1,32], index: 1, kind: input, shape index: {}]   ;;  %s4526_s2 = inlined_call_operand.vmem [shape: f32[2,1,32], index: 2, kind: input, shape index: {}]   ;;  %s4527_s3 = inlined_call_operand.vmem [shape: f32[2,1,32], index: 3, kind: input, shape index: {}]   ;;  %s4528_s4 = inlined_call_operand.vmem [shape: f32[2,1,32], index: 4, kind: input, shape index: {}]   ;;  %s4529_s5 = inlined_call_operand.vmem [shape: bf16[2,3,32,32], index: 5, kind: input, shape index: {}]   ;;  %s4530_s6 = inlined_call_operand.vmem [shape: f32[2,3,1,32], index: 6, kind: input, shape index: {}]   ;;  %s4531_s7 = inlined_call_operand.vmem [shape: bf16[2,4,8,32], index: 7, kind: input, shape index: {}]   ;;  %s4532_s8 = inlined_call_operand.vmem [shape: f32[2,1,32], index: 8, kind: input, shape index: {}]   ;;  %s4533_s9 = inlined_call_operand.vmem [shape: bf16[2,32,64], index: 9, kind: input, shape index: {}]   ;;  %s4534_s10 = inlined_call_operand.vmem [shape: f32[2,1,64], index: 10, kind: input, shape index: {}]   ;;  %s4535_s11 = inlined_call_operand.vmem [shape: bf16[2,64,32], index: 11, kind: input, shape index: {}]   ;;  %s4536_s12 = inlined_call_operand.vmem [shape: f32[2,1,32], index: 12, kind: input, shape index: {}]   ;;  %s4537_s13 = inlined_call_operand.vmem [shape: f32[1,32], index: 13, kind: input, shape index: {}]   ;;  %s4538_s14 = inlined_call_operand.vmem [shape: f32[1,32], index: 14, kind: input, shape index: {}]   ;;  %s4539_s15 = inlined_call_operand.vmem [shape: bf16[32,128], index: 15, kind: input, shape index: {}]   ;;  %s4540_s16 = inlined_call_operand.vmem [shape: f32[1,128], index: 16, kind: input, shape index: {}]   ;;  %s4541_s17 = inlined_call_operand.hbm [shape: f32[2,8,128], index: 17, kind: output, shape index: {}]  }
   0x1   :  { %4552 = sst [smem:[#allocation8_spill]] %s4524_s0 }
   0x2   :  { %4553 = sst [smem:[#allocation9_spill]] %s4525_s1 }
   0x3   :  { %4554 = sst [smem:[#allocation10_spill]] %s4526_s2 }
   0x4   :  { %4555 = sst [smem:[#allocation11_spill]] %s4527_s3 }
   0x5   :  { %22 = vsyncpa [#allocation3], 0 }
   0x6   :  { %24 = vsyncpa [#allocation3 + $0x1], 0  ;;  %s3940_s24 = smov 0   ;;  %s3942_s25 = smov 0  }
   0x7   :  { %s3944_s26 = smov 0   ;;  %s3946_s27 = smov 0  }
   0x8 LB: > { %4556 = sst [smem:[#allocation5_spill]] %s3838_s26  ;;  %s3961_s28 = sadd.s32 4294967295, %s3842_s27   ;;  %s3842_s27 = sphi %s3946_s27, %s4570_s27   ;;  %s3838_s26 = sphi %s3944_s26, %s4572_s26   ;;  %s3834_s25 = sphi %s3942_s25, %s4574_s25   ;;  %s3830_s24 = sphi %s3940_s24, %s4573_s24  }
   0x9   : > { %s3190_s29 = sadd.s32 4294967294, %s3842_s27   ;;  %s3965_s0 = sadd.s32 1, %s3842_s27  }
   0xa   : > { %4557 = sst [smem:[#allocation6_spill]] %s3965_s0  ;;  %s399_s30 = sadd.s32 1, %s3838_s26 }
   0xb   : > { %s396_s18 = ssub.s32 %s3842_s27, %s3965_s0  ;;  %p409_p0 = scmp.ne.s32.totalorder %s3838_s26, %s3834_s25 }
   0xc   : > { %p397_p1 = scmp.eq.s32.totalorder %s396_s18, 0  ;;  %p410_p2 = scmp.eq.s32.totalorder %s3961_s28, 1 }
   0xd   : > { %p415_p3 = scmp.ne.s32.totalorder %s3834_s25, %s3830_s24  ;;  %p416_p4 = scmp.eq.s32.totalorder %s3190_s29, 1 }
   0xe   : > { %s3976_s19 = scalar_select %p397_p1, %s3838_s26, %s399_s30  }
   0xf   : > { %p3978_p5 = por %p410_p2, %p409_p0  ;;  %p3982_p6 = por %p416_p4, %p415_p3 }
  0x10   : > { %4558 = sst [smem:[#allocation7_spill]] %s3976_s19  ;;  %p3193_p7 = scmp.ge.s32.totalorder %s3842_s27, 1 }
  0x11   : > { %p489_p8 = scmp.lt.s32.totalorder %s3842_s27, 3 }
  0x13   : > { %p490_p9 = pnand %p3193_p7, %p489_p8 }
  0x14   : > { %p540_p10 = scmp.lt.s32.totalorder (!%p490_p9), %s3961_s28, 1  ;;  %vm553_vm0 = vcmask (!%p490_p9), 261120   ;;  %s4561_s30 = sld [smem:[#allocation8_spill]] (!%p490_p9)  ;;  %v3704_v4 = vld [vmem:[%s4529_s5] sm:$0xff] (!%p490_p9)   ;;  %v3705_v5 = vld [vmem:[%s4529_s5 + $0x10] sm:$0xff] (!%p490_p9)   ;;  %v3844_v6 = vmov (!%p490_p9), 0.0   ;;  %v546_v55 = vlaneseq (!%p490_p9) }
  0x15   : > { %493 = sbr.rel (%p490_p9) target bundleno = 7551 (0x1d7f), region = 88  ;;  %3420 = vmatprep.subr.bf16.mxu0 (!%p490_p9), %v3844_v6  ;;  %3428 = vmatprep.subr.bf16.mxu1 (!%p490_p9), %v3844_v6  ;;  %v3706_v7 = vld [vmem:[%s4529_s5 + $0x8] sm:$0xff] (!%p490_p9)   ;;  %v3707_v8 = vld [vmem:[%s4529_s5 + $0x18] sm:$0xff] (!%p490_p9)   ;;  %vm3845_vm1 = vmmov (!%p490_p9), 0   ;;  %s4562_s19 = sld [smem:[#allocation9_spill]] (!%p490_p9)  ;;  %v3708_v23 = vld [vmem:[%s4529_s5 + $0x20] sm:$0xff] (!%p490_p9)  }
  0x16   : > { %3421 = vmatpush3.bf16.msra.mxu0 (!%p490_p9), %v3704_v4  ;;  %3429 = vmatpush3.bf16.msra.mxu1 (!%p490_p9), %v3705_v5  ;;  %s4563_s2 = sld [smem:[#allocation10_spill]] (!%p490_p9)  ;;  %v3709_v25 = vld [vmem:[%s4529_s5 + $0x28] sm:$0xff] (!%p490_p9)   ;;  %v3198_v26 = vld [vmem:[%s4530_s6] ss:$0 sm:$0xff] (!%p490_p9)  ;;  %v3207_v27 = vld [vmem:[%s4530_s6 + $0x1] ss:$0 sm:$0xff] (!%p490_p9) }
  0x17   : > { %3422 = vmatprep.subr.bf16.mxu0 (!%p490_p9), %v3844_v6  ;;  %3430 = vmatprep.subr.bf16.mxu1 (!%p490_p9), %v3844_v6  ;;  %v3216_v39 = vld [vmem:[%s4530_s6 + $0x2] ss:$0 sm:$0xff] (!%p490_p9)  ;;  %vm819_vm2 = vcmask (!%p490_p9), 1043456   ;;  %vm815_vm3 = vcmask (!%p490_p9), 64512   ;;  %v547_v56 = vshrl.u32 (!%p490_p9), %v546_v55, 7  ;;  %v549_v57 = vand.u32 (!%p490_p9), 127, %v546_v55 }
  0x18   : > { %3424 = vmatprep.mubr.msk.bf16.mxu0 (!%p490_p9), %vm3845_vm1, %v3844_v6  ;;  %3432 = vmatprep.mubr.msk.bf16.mxu1 (!%p490_p9), %vm3845_vm1, %v3844_v6  ;;  %s4546_s23 = smov (!%p490_p9), 104   ;;  %s4566_s3 = sld [smem:[#allocation11_spill]] (!%p490_p9)  ;;  %vm1736_vm6 = vcmask (!%p490_p9), 523264  }
  0x19   : > { %vm4080_vm4 = vcmp.le.s32.totalorder (!%p490_p9), %v549_v57, %v547_v56  ;;  %s4568_s26 = smov (!%p490_p9), 112  }
  0x1a   : > { %3423 = vmatpush3.bf16.msra.mxu0 (!%p490_p9), %v3706_v7  ;;  %3431 = vmatpush3.bf16.msra.mxu1 (!%p490_p9), %v3707_v8 }
  0x1b   : > { %3436 = vmatprep.subr.bf16.mxu0 (!%p490_p9), %v3844_v6  ;;  %3444 = vmatprep.subr.bf16.mxu1 (!%p490_p9), %v3844_v6  ;;  %v3196_v18 = vld [vmem:[%s4562_s19] ss:$0 sm:$0xff] (!%p490_p9) }
  0x1c   : > { %s541_s21 = scalar_select %p540_p10, %s3961_s28, 1  ;;  %v3197_v20 = vld [vmem:[%s4563_s2] ss:$0 sm:$0xff] }
  0x1e   : > { %s3195_s22 = sshll.u32 %s541_s21, 3  ;;  %s4567_s21 = smov 120  }
  0x1f   : > { %s543_s18 = scalar_lea.vmem %s4561_s30, %s3195_s22  ;;  %s4550_s22 = smov 120  }
  0x20   : > { %v3993_v0 = vld [vmem:[%s543_s18] sm:$0xff]  ;;  %s4548_s30 = smov 112   ;;  %s4569_s18 = smov 104  }
  0x21   : > { %v554_v1 = vsel %vm553_vm0, %v3993_v0, 0.0  ;;  %v559_v2 = vmul.f32 %v3993_v0, %v3993_v0 }
  0x22   : > { %555 = vadd.xlane.f32.xlu0 %v554_v1 }
  0x23   : > { %v560_v3 = vsel %vm553_vm0, %v559_v2, 0.0 }
  0x26   : > { %561 = vadd.xlane.f32.xlu0 %v560_v3 }
  0xaf   : > { %v556_v9 = vpop.xlane.xlu0 %555 }
  0xb0   : > { %v558_v10 = vmul.f32 0.03125, %v556_v9 }
  0xb2   : > { %v564_v12 = vmul.f32 %v558_v10, %v558_v10  ;;  %v566_v16 = vsub.f32 %v3993_v0, %v558_v10 }
  0xb3   : > { %v562_v11 = vpop.xlane.xlu0 %561 }
  0xb4   : > { %v563_v13 = vmul.f32 0.03125, %v562_v11 }
  0xb6   : > { %v565_v14 = vsub.f32 %v563_v13, %v564_v12 }
  0xb8   : > { %v567_v15 = vadd.f32 1e-05, %v565_v14 }
  0xba   : > { %3730 = vrsqrt.f32 %v567_v15 }
  0xc4   : > { %v3731_v17 = vpop.eup %3730 }
  0xc5   : > { %v569_v19 = vmul.f32 %v3731_v17, %v566_v16 }
  0xc7   : > { %v576_v21 = vmul.f32 %v3196_v18, %v569_v19 }
  0xc9   : > { %v583_v22 = vadd.f32 %v3197_v20, %v576_v21 }
  0xcb   : > { %v588_v24 = vpack.c.bf16 %v583_v22, %v583_v22 }
  0xcd   : > { %3425 = vmatmul.mubr.msk.bf16.vlgmr.msra.gmra.mrb[0].mxu0 %vm553_vm0, %v588_v24  ;;  %3433 = vmatmul.mubr.msk.bf16.vlgmr.msra.gmra.mrb[0].mxu1 %vm553_vm0, %v588_v24 }
  0xce   : > { %3437 = vmatpush3.bf16.msra.mxu0 %v3708_v23  ;;  %3440 = vmatprep.mubr.msk.bf16.mxu0 %vm3845_vm1, %v3844_v6 }
  0xcf   : > { %3438 = vmatprep.subr.bf16.mxu0 %v3844_v6  ;;  %3446 = vmatprep.mubr.msk.bf16.mxu1 %vm3845_vm1, %v3844_v6 }
  0xd2   : > { %3439 = vmatpush3.bf16.msra.mxu0 %v3709_v25 }
  0xd3   : > { %3450 = vmatprep.subr.bf16.mxu0 %v3844_v6 }
  0xd5   : > { %3441 = vmatmul.mubr.msk.bf16.vlgmr.msra.gmra.mrb[4].mxu0 %vm553_vm0, %v588_v24 }
  0xd6   : > { %3452 = vmatprep.mubr.msk.bf16.mxu0 %vm3845_vm1, %v3844_v6 }
 0x1a0   : > { %v645_v28 = vpop.f32.mrb[0].mxu0  ;;  %v710_v29 = vpop.f32.mrb[0].mxu1 }
 0x1a1   : > { %v646_v30 = vadd.f32 %v3198_v26, %v645_v28  ;;  %v4052_v31 = vadd.f32 %v3207_v27, %v710_v29  ;;  %v3426_v32 = vpop.f32.mrb[1].mxu0  ;;  %v3434_v33 = vpop.f32.mrb[1].mxu1 }
 0x1a2   : > { %v648_v34 = vpop.f32.mrb[2].mxu0  ;;  %v713_v35 = vpop.f32.mrb[2].mxu1 }
 0x1a3   : > { %781 = vxpose.xlu0.b32.start.end [1/1] (short) (narrow) %v4052_v31, 8  ;;  %927 = vrot.lane.b32.xlu1 %v4052_v31, %s4550_s22  ;;  %v3427_v36 = vpop.f32.mrb[3].mxu0  ;;  %v3435_v37 = vpop.f32.mrb[3].mxu1  ;;  %v4057_v38 = vpack.c.bf16 %v646_v30, %v646_v30  ;;  %v924_v30 = vld [vmem:[%s4531_s7] sm:$0xf] }
 0x1a4   : > { %v1128_v34 = vsel %vm819_vm2, %v924_v30, 0  ;;  %v3224_v35 = vld [vmem:[%s4531_s7 + $0x4] sm:$0xf] }
 0x1a5   : > { %v1082_v36 = vsel %vm819_vm2, %v3224_v35, 0 }
 0x1a7   : > { %964 = vrot.lane.b32.xlu1 %v4057_v38, %s4550_s22 }
 0x1a8   : > { %v775_v40 = vpop.f32.mrb[4].mxu0 }
 0x1a9   : > { %v776_v41 = vadd.f32 %v3216_v39, %v775_v40  ;;  %v3442_v42 = vpop.f32.mrb[5].mxu0 }
 0x1aa   : > { %v778_v43 = vpop.f32.mrb[6].mxu0 }
 0x1ab   : > { %v4064_v44 = vpack.c.bf16 %v776_v41, %v776_v41  ;;  %v3443_v45 = vpop.f32.mrb[7].mxu0 }
 0x1ad   : > { %v882_v46 = vsel %vm819_vm2, %v4064_v44, 0 }
 0x1ae   : > { %3451 = vmatpush3.bf16.msra.mxu0 %v882_v46 }
 0x1af   : > { %3462 = vmatprep.subr.bf16.mxu0 %v3844_v6 }
 0x215   : > { %v928_v47 = vpop.permute.xlu1 %927 }
 0x216   : > { %930 = vxpose.xlu1.b32.start.end [1/1] (short) (narrow) %v928_v47, 8 }
 0x219   : > { %v965_v51 = vpop.permute.xlu1 %964 }
 0x223   : > { %v797_v48 = vpop.trf.xlu0 }
 0x224   : > { %v814_v49 = vpack.c.bf16 %v797_v48, %v797_v48 }
 0x226   : > { %v821_v50 = vsel %vm819_vm2, %v814_v49, 0 }
 0x227   : > { %3445 = vmatpush3.bf16.msra.mxu1 %v821_v50 }
 0x228   : > { %3456 = vmatprep.subr.bf16.mxu1 %v3844_v6 }
 0x22a   : > { %3447 = vmatmul.mubr.msk.bf16.vlgmr.msra.gmra.mrb[4].mxu1 %vm815_vm3, %v4057_v38 }
 0x22b   : > { %3458 = vmatprep.mubr.msk.bf16.mxu1 %vm3845_vm1, %v3844_v6 }
 0x296   : > { %v946_v52 = vpop.trf.xlu1 }
 0x297   : > { %v962_v53 = vpack.c.bf16 %v946_v52, %v946_v52 }
 0x299   : > { %v970_v54 = vsel %vm819_vm2, %v962_v53, 0 }
 0x29a   : > { %3457 = vmatpush3.bf16.msra.mxu1 %v970_v54 }
 0x29b   : > { %3468 = vmatprep.subr.bf16.mxu1 %v3844_v6 }
 0x29d   : > { %3459 = vmatmul.mubr.msk.bf16.vlgmr.msra.gmra.mrb[8].mxu1 %vm815_vm3, %v965_v51 }
 0x29e   : > { %3470 = vmatprep.mubr.msk.bf16.mxu1 %vm3845_vm1, %v3844_v6  ;;  %3469 = vmatpush3.bf16.msra.mxu1 %v1082_v36 }
 0x29f   : > { %3480 = vmatprep.subr.bf16.mxu1 %v3844_v6 }
 0x2fd   : > { %v857_v58 = vpop.f32.mrb[4].mxu1 }
 0x2fe   : > { %v863_v60 = vmul.f32 0.35355338, %v857_v58  ;;  %v3448_v61 = vpop.f32.mrb[5].mxu1 }
 0x2ff   : > { %v860_v62 = vpop.f32.mrb[6].mxu1 }
 0x300   : > { %v3449_v63 = vpop.f32.mrb[7].mxu1  ;;  %v864_v1 = vsel %vm4080_vm4, %v863_v60, -1e+30 }
 0x301   : > { %v865_v2 = vsel %vm815_vm3, %v864_v1, -inf }
 0x302   : > { %866 = vmax.xlane.f32.xlu1 %v865_v2 }
 0x370   : > { %v1006_v3 = vpop.f32.mrb[8].mxu1 }
 0x371   : > { %v1012_v4 = vmul.f32 0.35355338, %v1006_v3  ;;  %v3460_v5 = vpop.f32.mrb[9].mxu1 }
 0x372   : > { %v1009_v7 = vpop.f32.mrb[10].mxu1 }
 0x373   : > { %v3461_v8 = vpop.f32.mrb[11].mxu1  ;;  %v1013_v9 = vsel %vm4080_vm4, %v1012_v4, -1e+30 }
 0x374   : > { %v1014_v10 = vsel %vm815_vm3, %v1013_v9, -inf }
 0x375   : > { %1015 = vmax.xlane.f32.xlu0 %v1014_v10 }
 0x38b   : > { %1170 = vrot.lane.b32.xlu0 %v4052_v31, %s4548_s30 }
 0x38f   : > { %v867_v11 = vpop.xlane.xlu1 %866 }
 0x390   : > { %v868_v12 = vsub.f32 %v864_v1, %v867_v11 }
 0x392   : > { %v869_v13 = vmul.f32 1.442695, %v868_v12 }
 0x394   : > { %3732 = vpow2.f32 %v869_v13 }
 0x39e   : > { %v3733_v14 = vpop.eup %3732 }
 0x39f   : > { %v871_v15 = vsel %vm815_vm3, %v3733_v14, 0.0 }
 0x3a0   : > { %872 = vadd.xlane.f32.xlu1 %v871_v15 }
 0x402   : > { %v1016_v16 = vpop.xlane.xlu0 %1015 }
 0x403   : > { %v1017_v17 = vsub.f32 %v1013_v9, %v1016_v16 }
 0x405   : > { %v1018_v18 = vmul.f32 1.442695, %v1017_v17 }
 0x406   : > { %v1171_v25 = vpop.permute.xlu0 %1170 }
 0x407   : > { %3734 = vpow2.f32 %v1018_v18 }
 0x411   : > { %v3735_v19 = vpop.eup %3734 }
 0x412   : > { %v1020_v20 = vsel %vm815_vm3, %v3735_v19, 0.0 }
 0x413   : > { %1021 = vadd.xlane.f32.xlu1 %v1020_v20 }
 0x424   : > { %1027 = vrot.lane.b32.xlu1 %v4064_v44, %s4550_s22 }
 0x428   : > { %1206 = vrot.lane.b32.xlu1 %v4057_v38, %s4548_s30 }
 0x42d   : > { %v873_v21 = vpop.xlane.xlu1 %872 }
 0x42e   : > { %3736 = vrcp.f32 %v873_v21 }
 0x438   : > { %v3737_v22 = vpop.eup %3736 }
 0x439   : > { %v875_v23 = vmul.f32 %v3737_v22, %v3733_v14  ;;  %v3229_v22 = vld [vmem:[%s4531_s7 + $0x8] sm:$0xf] }
 0x43b   : > { %v876_v24 = vpack.c.bf16 %v875_v23, %v875_v23  ;;  %v1323_v23 = vsel %vm819_vm2, %v3229_v22, 0 }
 0x43d   : > { %3453 = vmatmul.mubr.msk.bf16.vlgmr.msra.gmra.mrb[8].mxu0 %vm815_vm3, %v876_v24 }
 0x43e   : > { %3464 = vmatprep.mubr.msk.bf16.mxu0 %vm3845_vm1, %v3844_v6 }
 0x451   : > { %1173 = vxpose.xlu1.b32.start.end [1/1] (short) (narrow) %v1171_v25, 8 }
 0x4a0   : > { %v1022_v26 = vpop.xlane.xlu1 %1021 }
 0x4a1   : > { %3738 = vrcp.f32 %v1022_v26 }
 0x4a4   : > { %v1028_v27 = vpop.permute.xlu1 %1027 }
 0x4a5   : > { %v1033_v28 = vsel %vm819_vm2, %v1028_v27, 0 }
 0x4a6   : > { %3463 = vmatpush3.bf16.msra.mxu0 %v1033_v28 }
 0x4a7   : > { %3474 = vmatprep.subr.bf16.mxu0 %v3844_v6 }
 0x4a8   : > { %v1207_v43 = vpop.permute.xlu1 %1206 }
 0x4ab   : > { %v3739_v29 = vpop.eup %3738 }
 0x4ac   : > { %v1024_v32 = vmul.f32 %v3739_v29, %v3735_v19 }
 0x4ae   : > { %v1025_v33 = vpack.c.bf16 %v1024_v32, %v1024_v32 }
 0x4b0   : > { %3465 = vmatmul.mubr.msk.bf16.vlgmr.msra.gmra.mrb[12].mxu0 %vm815_vm3, %v1025_v33 }
 0x4b1   : > { %3475 = vmatpush3.bf16.msra.mxu0 %v1128_v34  ;;  %3476 = vmatprep.mubr.msk.bf16.mxu0 %vm3845_vm1, %v3844_v6 }
 0x4b2   : > { %3486 = vmatprep.subr.bf16.mxu0 %v3844_v6 }
 0x4d1   : > { %v1189_v45 = vpop.trf.xlu1 }
 0x4d2   : > { %v1205_v46 = vpack.c.bf16 %v1189_v45, %v1189_v45 }
 0x4d4   : > { %v1212_v50 = vsel %vm819_vm2, %v1205_v46, 0 }
 0x510   : > { %v918_v37 = vpop.f32.mrb[8].mxu0 }
 0x511   : > { %v925_v39 = vpack.c.bf16 %v918_v37, %v918_v37  ;;  %v3454_v40 = vpop.f32.mrb[9].mxu0 }
 0x512   : > { %v921_v41 = vpop.f32.mrb[10].mxu0 }
 0x513   : > { %v3455_v42 = vpop.f32.mrb[11].mxu0  ;;  %3477 = vmatmul.mubr.msk.bf16.vlgmr.msra.gmra.mrb[16].mxu0 %vm815_vm3, %v925_v39 }
 0x514   : > { %3488 = vmatprep.mubr.msk.bf16.mxu0 %vm3845_vm1, %v3844_v6 }
 0x583   : > { %v1069_v47 = vpop.f32.mrb[12].mxu0 }
 0x584   : > { %v1077_v48 = vpack.c.bf16 %v1069_v47, %v1069_v47  ;;  %v3466_v49 = vpop.f32.mrb[13].mxu0 }
 0x585   : > { %v1072_v51 = vpop.f32.mrb[14].mxu0 }
 0x586   : > { %v3467_v52 = vpop.f32.mrb[15].mxu0  ;;  %3471 = vmatmul.mubr.msk.bf16.vlgmr.msra.gmra.mrb[12].mxu1 %vm815_vm3, %v1077_v48 }
 0x587   : > { %3481 = vmatpush3.bf16.msra.mxu1 %v1212_v50  ;;  %3482 = vmatprep.mubr.msk.bf16.mxu1 %vm3845_vm1, %v3844_v6 }
 0x588   : > { %3492 = vmatprep.subr.bf16.mxu1 %v3844_v6 }
 0x58e   : > { %3483 = vmatmul.mubr.msk.bf16.vlgmr.msra.gmra.mrb[16].mxu1 %vm815_vm3, %v1207_v43 }
 0x58f   : > { %3494 = vmatprep.mubr.msk.bf16.mxu1 %vm3845_vm1, %v3844_v6  ;;  %3493 = vmatpush3.bf16.msra.mxu1 %v1323_v23 }
 0x590   : > { %3504 = vmatprep.subr.bf16.mxu1 %v3844_v6 }
 0x5e6   : > { %v1164_v53 = vpop.f32.mrb[16].mxu0 }
 0x5e7   : > { %v3478_v54 = vpop.f32.mrb[17].mxu0 }
 0x5e8   : > { %v1167_v55 = vpop.f32.mrb[18].mxu0 }
 0x5e9   : > { %v3479_v56 = vpop.f32.mrb[19].mxu0 }
 0x659   : > { %v1118_v57 = vpop.f32.mrb[12].mxu1 }
 0x65a   : > { %v4127_v58 = vadd.f32 %v1164_v53, %v1118_v57  ;;  %v3472_v60 = vpop.f32.mrb[13].mxu1 }
 0x65b   : > { %v1121_v61 = vpop.f32.mrb[14].mxu1 }
 0x65c   : > { %v3473_v62 = vpop.f32.mrb[15].mxu1 }
 0x661   : > { %v1248_v63 = vpop.f32.mrb[16].mxu1 }
 0x662   : > { %v1254_v1 = vmul.f32 0.35355338, %v1248_v63  ;;  %v3484_v2 = vpop.f32.mrb[17].mxu1  ;;  %v3235_v63 = vld [vmem:[%s4532_s8] ss:$0 sm:$0xff] }
 0x663   : > { %v1251_v3 = vpop.f32.mrb[18].mxu1 }
 0x664   : > { %v3485_v4 = vpop.f32.mrb[19].mxu1  ;;  %v1255_v5 = vsel %vm4080_vm4, %v1254_v1, -1e+30 }
 0x665   : > { %v1256_v7 = vsel %vm815_vm3, %v1255_v5, -inf }
 0x666   : > { %1257 = vmax.xlane.f32.xlu0 %v1256_v7 }
 0x67c   : > { %1366 = vrot.lane.b32.xlu0 %v4052_v31, %s4546_s23 }
 0x680   : > { %1268 = vrot.lane.b32.xlu0 %v4064_v44, %s4548_s30 }
 0x684   : > { %1402 = vrot.lane.b32.xlu0 %v4057_v38, %s4546_s23 }
 0x6f3   : > { %v1258_v8 = vpop.xlane.xlu0 %1257 }
 0x6f4   : > { %v1259_v9 = vsub.f32 %v1255_v5, %v1258_v8 }
 0x6f6   : > { %v1260_v10 = vmul.f32 1.442695, %v1259_v9 }
 0x6f7   : > { %v1367_v11 = vpop.permute.xlu0 %1366 }
 0x6f8   : > { %3740 = vpow2.f32 %v1260_v10  ;;  %1369 = vxpose.xlu0.b32.start.end [1/1] (short) (narrow) %v1367_v11, 8  ;;  %v3710_v11 = vld [vmem:[%s4533_s9] sm:$0xff]  }
 0x6fb   : > { %v1269_v12 = vpop.permute.xlu0 %1268 }
 0x6fc   : > { %v1274_v13 = vsel %vm819_vm2, %v1269_v12, 0 }
 0x6fd   : > { %3487 = vmatpush3.bf16.msra.mxu0 %v1274_v13 }
 0x6fe   : > { %3498 = vmatprep.subr.bf16.mxu0 %v3844_v6 }
 0x6ff   : > { %v1403_v16 = vpop.permute.xlu0 %1402 }
 0x702   : > { %v3741_v14 = vpop.eup %3740 }
 0x703   : > { %v1262_v31 = vsel %vm815_vm3, %v3741_v14, 0.0 }
 0x704   : > { %1263 = vadd.xlane.f32.xlu1 %v1262_v31 }
 0x778   : > { %v1385_v38 = vpop.trf.xlu0 }
 0x779   : > { %v1401_v17 = vpack.c.bf16 %v1385_v38, %v1385_v38 }
 0x77b   : > { %v1408_v21 = vsel %vm819_vm2, %v1401_v17, 0 }
 0x791   : > { %v1264_v15 = vpop.xlane.xlu1 %1263 }
 0x792   : > { %3742 = vrcp.f32 %v1264_v15 }
 0x79c   : > { %v3743_v18 = vpop.eup %3742 }
 0x79d   : > { %v1266_v19 = vmul.f32 %v3743_v18, %v3741_v14 }
 0x79f   : > { %v1267_v20 = vpack.c.bf16 %v1266_v19, %v1266_v19  ;;  %v3236_v19 = vld [vmem:[%s4566_s3] ss:$0 sm:$0xff] }
 0x7a1   : > { %3489 = vmatmul.mubr.msk.bf16.vlgmr.msra.gmra.mrb[20].mxu0 %vm815_vm3, %v1267_v20 }
 0x7a2   : > { %3499 = vmatpush3.bf16.msra.mxu0 %v1408_v21  ;;  %3500 = vmatprep.mubr.msk.bf16.mxu0 %vm3845_vm1, %v3844_v6  ;;  %v3237_v21 = vld [vmem:[%s4528_s4] ss:$0 sm:$0xff] }
 0x7a3   : > { %3510 = vmatprep.subr.bf16.mxu0 %v3844_v6 }
 0x7a9   : > { %3501 = vmatmul.mubr.msk.bf16.vlgmr.msra.gmra.mrb[24].mxu0 %vm815_vm3, %v1403_v16 }
 0x7aa   : > { %3512 = vmatprep.mubr.msk.bf16.mxu0 %vm3845_vm1, %v3844_v6 }
 0x874   : > { %v1310_v24 = vpop.f32.mrb[20].mxu0 }
 0x875   : > { %v1318_v25 = vpack.c.bf16 %v1310_v24, %v1310_v24  ;;  %v3490_v26 = vpop.f32.mrb[21].mxu0 }
 0x876   : > { %v1313_v27 = vpop.f32.mrb[22].mxu0  ;;  %v3713_v26 = vld [vmem:[%s4535_s11 + $0x8] sm:$0xff]  }
 0x877   : > { %v3491_v28 = vpop.f32.mrb[23].mxu0  ;;  %3495 = vmatmul.mubr.msk.bf16.vlgmr.msra.gmra.mrb[20].mxu1 %vm815_vm3, %v1318_v25  ;;  %v3712_v25 = vld [vmem:[%s4535_s11] sm:$0xff]   ;;  %v3714_v27 = vld [vmem:[%s4535_s11 + $0x10] sm:$0xff]  }
 0x878   : > { %3506 = vmatprep.mubr.msk.bf16.mxu1 %vm3845_vm1, %v3844_v6  ;;  %v3715_v28 = vld [vmem:[%s4535_s11 + $0x18] sm:$0xff]  }
 0x87c   : > { %v1444_v29 = vpop.f32.mrb[24].mxu0 }
 0x87d   : > { %v1450_v30 = vmul.f32 0.35355338, %v1444_v29  ;;  %v3502_v32 = vpop.f32.mrb[25].mxu0  ;;  %v3238_v29 = vld [vmem:[%s4534_s10] ss:$0 sm:$0xff] }
 0x87e   : > { %v1447_v33 = vpop.f32.mrb[26].mxu0 }
 0x87f   : > { %v3503_v34 = vpop.f32.mrb[27].mxu0  ;;  %v1451_v35 = vsel %vm4080_vm4, %v1450_v30, -1e+30 }
 0x880   : > { %v1452_v36 = vsel %vm815_vm3, %v1451_v35, -inf }
 0x881   : > { %1453 = vmax.xlane.f32.xlu1 %v1452_v36 }
 0x90e   : > { %v1454_v37 = vpop.xlane.xlu1 %1453 }
 0x90f   : > { %v1455_v39 = vsub.f32 %v1451_v35, %v1454_v37 }
 0x911   : > { %v1456_v40 = vmul.f32 1.442695, %v1455_v39 }
 0x913   : > { %3744 = vpow2.f32 %v1456_v40 }
 0x91d   : > { %v3745_v41 = vpop.eup %3744 }
 0x91e   : > { %v1458_v42 = vsel %vm815_vm3, %v3745_v41, 0.0 }
 0x91f   : > { %1459 = vadd.xlane.f32.xlu1 %v1458_v42 }
 0x930   : > { %1464 = vrot.lane.b32.xlu1 %v4064_v44, %s4546_s23  ;;  %v3233_v44 = vld [vmem:[%s4531_s7 + $0xc] sm:$0xf] }
 0x931   : > { %v1519_v55 = vsel %vm819_vm2, %v3233_v44, 0 }
 0x932   : > { %3511 = vmatpush3.bf16.msra.mxu0 %v1519_v55 }
 0x933   : > { %3524 = vmatprep.subr.bf16.mxu0 %v3844_v6 }
 0x94a   : > { %v1359_v43 = vpop.f32.mrb[20].mxu1 }
 0x94b   : > { %v1365_v45 = vadd.f32 %v1359_v43, %v4127_v58  ;;  %v3496_v46 = vpop.f32.mrb[21].mxu1 }
 0x94c   : > { %v1362_v47 = vpop.f32.mrb[22].mxu1 }
 0x94d   : > { %v3497_v48 = vpop.f32.mrb[23].mxu1 }
 0x9ac   : > { %v1460_v49 = vpop.xlane.xlu1 %1459 }
 0x9ad   : > { %3746 = vrcp.f32 %v1460_v49 }
 0x9b0   : > { %v1465_v50 = vpop.permute.xlu1 %1464 }
 0x9b1   : > { %v1470_v51 = vsel %vm819_vm2, %v1465_v50, 0 }
 0x9b2   : > { %3505 = vmatpush3.bf16.msra.mxu1 %v1470_v51 }
 0x9b3   : > { %3516 = vmatprep.subr.bf16.mxu1 %v3844_v6 }
 0x9b7   : > { %v3747_v52 = vpop.eup %3746 }
 0x9b8   : > { %v1462_v53 = vmul.f32 %v3747_v52, %v3745_v41 }
 0x9ba   : > { %v1463_v54 = vpack.c.bf16 %v1462_v53, %v1462_v53 }
 0x9bc   : > { %3507 = vmatmul.mubr.msk.bf16.vlgmr.msra.gmra.mrb[24].mxu1 %vm815_vm3, %v1463_v54 }
 0x9bd   : > { %3520 = vmatprep.mubr.msk.bf16.mxu1 %vm3845_vm1, %v3844_v6  ;;  %3517 = vmatpush3.bf16.msra.mxu1 %v3710_v11 }
 0x9be   : > { %3518 = vmatprep.subr.bf16.mxu1 %v3844_v6 }
 0xa8f   : > { %v1506_v56 = vpop.f32.mrb[24].mxu1 }
 0xa90   : > { %v1514_v57 = vpack.c.bf16 %v1506_v56, %v1506_v56  ;;  %v3508_v58 = vpop.f32.mrb[25].mxu1 }
 0xa91   : > { %v1509_v60 = vpop.f32.mrb[26].mxu1 }
 0xa92   : > { %v3509_v61 = vpop.f32.mrb[27].mxu1  ;;  %3513 = vmatmul.mubr.msk.bf16.vlgmr.msra.gmra.mrb[28].mxu0 %vm815_vm3, %v1514_v57 }
 0xa93   : > { %3532 = vmatprep.mubr.msk.bf16.mxu0 %vm3845_vm1, %v3844_v6  ;;  %3525 = vmatpush3.bf16.msra.mxu0 %v3712_v25 }
 0xa94   : > { %3526 = vmatprep.subr.bf16.mxu0 %v3844_v6 }
 0xa97   : > { %3527 = vmatpush3.bf16.msra.mxu0 %v3713_v26 }
 0xa98   : > { %3528 = vmatprep.subr.bf16.mxu0 %v3844_v6 }
 0xa9b   : > { %3529 = vmatpush3.bf16.msra.mxu0 %v3714_v27  ;;  %v3720_v27 = vld [vmem:[%s4529_s5 + $0x40] sm:$0xff]  }
 0xa9c   : > { %3530 = vmatprep.subr.bf16.mxu0 %v3844_v6 }
 0xa9f   : > { %3531 = vmatpush3.bf16.msra.mxu0 %v3715_v28 }
 0xaa0   : > { %3552 = vmatprep.subr.bf16.mxu0 %v3844_v6 }
 0xb65   : > { %v1555_v62 = vpop.f32.mrb[28].mxu0 }
 0xb66   : > { %v1561_v1 = vadd.f32 %v1555_v62, %v1365_v45  ;;  %v3514_v2 = vpop.f32.mrb[29].mxu0 }
 0xb67   : > { %v1558_v3 = vpop.f32.mrb[30].mxu0 }
 0xb68   : > { %v1569_v4 = vadd.f32 %v3235_v63, %v1561_v1  ;;  %v3515_v5 = vpop.f32.mrb[31].mxu0  ;;  %v3242_v1 = vld [vmem:[%s4536_s12] ss:$0 sm:$0xff] }
 0xb6a   : > { %v4181_v7 = vadd.f32 %v1569_v4, %v3993_v0  ;;  %v3711_v0 = vld [vmem:[%s4533_s9 + $0x8] sm:$0xff]  }
 0xb6b   : > { %3519 = vmatpush3.bf16.msra.mxu1 %v3711_v0 }
 0xb6c   : > { %v1573_v8 = vsel %vm553_vm0, %v4181_v7, 0.0  ;;  %v1577_v9 = vmul.f32 %v4181_v7, %v4181_v7  ;;  %3536 = vmatprep.subr.bf16.mxu1 %v3844_v6 }
 0xb6d   : > { %1574 = vadd.xlane.f32.xlu0 %v1573_v8 }
 0xb6e   : > { %v1578_v10 = vsel %vm553_vm0, %v1577_v9, 0.0 }
 0xb6f   : > { %1579 = vadd.xlane.f32.xlu1 %v1578_v10 }
 0xbfa   : > { %v1575_v12 = vpop.xlane.xlu0 %1574 }
 0xbfb   : > { %v1576_v13 = vmul.f32 0.03125, %v1575_v12  ;;  %v3716_v12 = vld [vmem:[%s4529_s5 + $0x30] sm:$0xff]  }
 0xbfc   : > { %v1580_v14 = vpop.xlane.xlu1 %1579 }
 0xbfd   : > { %v1582_v31 = vmul.f32 %v1576_v13, %v1576_v13  ;;  %v1581_v15 = vmul.f32 0.03125, %v1580_v14  ;;  %v1584_v17 = vsub.f32 %v4181_v7, %v1576_v13  ;;  %v3718_v13 = vld [vmem:[%s4529_s5 + $0x38] sm:$0xff]  }
 0xbfe   : > { %v3719_v14 = vld [vmem:[%s4529_s5 + $0x58] sm:$0xff]  }
 0xbff   : > { %v1583_v16 = vsub.f32 %v1581_v15, %v1582_v31 }
 0xc01   : > { %v1585_v38 = vadd.f32 1e-05, %v1583_v16 }
 0xc03   : > { %3748 = vrsqrt.f32 %v1585_v38 }
 0xc0d   : > { %v3749_v18 = vpop.eup %3748 }
 0xc0e   : > { %v1587_v20 = vmul.f32 %v3749_v18, %v1584_v17 }
 0xc10   : > { %v1594_v22 = vmul.f32 %v3236_v19, %v1587_v20 }
 0xc12   : > { %v1601_v23 = vadd.f32 %v3237_v21, %v1594_v22  ;;  %v3250_v22 = vld [vmem:[%s4562_s19 + $0x1] ss:$0 sm:$0xff] }
 0xc14   : > { %v1606_v24 = vpack.c.bf16 %v1601_v23, %v1601_v23 }
 0xc16   : > { %3521 = vmatmul.mubr.msk.bf16.vlgmr.msra.gmra.mrb[28].mxu1 %vm553_vm0, %v1606_v24  ;;  %v3251_v24 = vld [vmem:[%s4563_s2 + $0x1] ss:$0 sm:$0xff]  ;;  %s3332_s2 = sshll.u32 %s3961_s28, 7 }
 0xc17   : > { %3540 = vmatprep.mubr.msk.bf16.mxu1 %vm3845_vm1, %v3844_v6  ;;  %3537 = vmatpush3.bf16.msra.mxu1 %v3716_v12 }
 0xc18   : > { %3538 = vmatprep.subr.bf16.mxu1 %v3844_v6 }
 0xc1b   : > { %3539 = vmatpush3.bf16.msra.mxu1 %v3718_v13 }
 0xc1c   : > { %3544 = vmatprep.subr.bf16.mxu1 %v3844_v6 }
 0xce9   : > { %v1663_v30 = vpop.f32.mrb[28].mxu1 }
 0xcea   : > { %v1664_v32 = vadd.f32 %v3238_v29, %v1663_v30  ;;  %v3522_v33 = vpop.f32.mrb[29].mxu1  ;;  %v3721_v29 = vld [vmem:[%s4529_s5 + $0x48] sm:$0xff]   ;;  %v3257_v30 = vld [vmem:[%s4530_s6 + $0x3] ss:$0 sm:$0xff] }
 0xceb   : > { %v1666_v34 = vpop.f32.mrb[30].mxu1 }
 0xcec   : > { %v1670_v35 = vmul.f32 0.70710677, %v1664_v32  ;;  %v3523_v36 = vpop.f32.mrb[31].mxu1  ;;  %v1669_v60 = vmul.f32 0.5, %v1664_v32  ;;  %v3275_v32 = vld [vmem:[%s4530_s6 + $0x5] ss:$0 sm:$0xff] }
 0xcee   : > { %v1671_v37 = vand.u32 2147483647, %v1670_v35  ;;  %vm1691_vm5 = vcmp.lt.f32.partialorder %v1670_v35, 0.0 }
 0xcf0   : > { %v1672_v39 = vmul.f32 0.3275911, %v1671_v37  ;;  %v1685_v41 = vsub.f32 0.0, %v1671_v37 }
 0xcf2   : > { %v1673_v40 = vadd.f32 1.0, %v1672_v39  ;;  %v1686_v43 = vmul.f32 %v1685_v41, %v1671_v37 }
 0xcf4   : > { %3750 = vrcp.f32 %v1673_v40  ;;  %v1687_v47 = vmul.f32 1.442695, %v1686_v43 }
 0xcf6   : > { %3752 = vpow2.f32 %v1687_v47 }
 0xcfe   : > { %v3751_v42 = vpop.eup %3750 }
 0xcff   : > { %v1676_v45 = vmul.f32 1.0614054, %v3751_v42 }
 0xd00   : > { %v3753_v44 = vpop.eup %3752 }
 0xd01   : > { %v1677_v46 = vadd.f32 -1.4531521, %v1676_v45 }
 0xd03   : > { %v1678_v48 = vmul.f32 %v3751_v42, %v1677_v46 }
 0xd05   : > { %v1679_v49 = vadd.f32 1.4214138, %v1678_v48  ;;  %v3266_v48 = vld [vmem:[%s4530_s6 + $0x4] ss:$0 sm:$0xff] }
 0xd07   : > { %v1680_v50 = vmul.f32 %v3751_v42, %v1679_v49 }
 0xd09   : > { %v1681_v51 = vadd.f32 -0.28449672, %v1680_v50 }
 0xd0b   : > { %v1682_v52 = vmul.f32 %v3751_v42, %v1681_v51 }
 0xd0d   : > { %v1683_v53 = vadd.f32 0.2548296, %v1682_v52 }
 0xd0f   : > { %v1684_v54 = vmul.f32 %v3751_v42, %v1683_v53 }
 0xd11   : > { %v1689_v55 = vmul.f32 %v3753_v44, %v1684_v54 }
 0xd13   : > { %v1690_v56 = vsub.f32 1.0, %v1689_v55 }
 0xd15   : > { %v1692_v57 = vsub.f32 0.0, %v1690_v56 }
 0xd17   : > { %v1693_v58 = vsel %vm1691_vm5, %v1692_v57, %v1690_v56 }
 0xd18   : > { %v1694_v61 = vadd.f32 1.0, %v1693_v58 }
 0xd1a   : > { %v1695_v62 = vmul.f32 %v1694_v61, %v1669_v60 }
 0xd1c   : > { %v1704_v63 = vpack.c.bf16 %v1695_v62, %v1695_v62 }
 0xd1e   : > { %3533 = vmatmul.mubr.msk.bf16.vlgmr.msra.gmra.mrb[32].mxu0 %vm1736_vm6, %v1704_v63 }
 0xd1f   : > { %3556 = vmatprep.mubr.msk.bf16.mxu0 %vm3845_vm1, %v3844_v6 }
 0xdf1   : > { %v1774_v2 = vpop.f32.mrb[32].mxu0 }
 0xdf2   : > { %v1775_v3 = vadd.f32 %v3242_v1, %v1774_v2  ;;  %v3534_v4 = vpop.f32.mrb[33].mxu0 }
 0xdf3   : > { %v1777_v5 = vpop.f32.mrb[34].mxu0 }
 0xdf4   : > { %v4232_v8 = vadd.f32 %v1775_v3, %v4181_v7  ;;  %v3535_v9 = vpop.f32.mrb[35].mxu0  ;;  %v3717_v7 = vld [vmem:[%s4529_s5 + $0x50] sm:$0xff]  }
 0xdf5   : > { %3553 = vmatpush3.bf16.msra.mxu0 %v3717_v7 }
 0xdf6   : > { %v1785_v10 = vsel %vm553_vm0, %v4232_v8, 0.0  ;;  %v1789_v11 = vmul.f32 %v4232_v8, %v4232_v8  ;;  %3554 = vmatprep.subr.bf16.mxu0 %v3844_v6 }
 0xdf7   : > { %1786 = vadd.xlane.f32.xlu0 %v1785_v10 }
 0xdf8   : > { %v1790_v0 = vsel %vm553_vm0, %v1789_v11, 0.0 }
 0xdf9   : > { %1791 = vadd.xlane.f32.xlu1 %v1790_v0  ;;  %3555 = vmatpush3.bf16.msra.mxu0 %v3719_v14 }
 0xdfa   : > { %3566 = vmatprep.subr.bf16.mxu0 %v3844_v6 }
 0xe84   : > { %v1787_v31 = vpop.xlane.xlu0 %1786 }
 0xe85   : > { %v1788_v15 = vmul.f32 0.03125, %v1787_v31 }
 0xe86   : > { %v1792_v16 = vpop.xlane.xlu1 %1791 }
 0xe87   : > { %v1794_v38 = vmul.f32 %v1788_v15, %v1788_v15  ;;  %v1793_v17 = vmul.f32 0.03125, %v1792_v16  ;;  %v1796_v20 = vsub.f32 %v4232_v8, %v1788_v15 }
 0xe89   : > { %v1795_v18 = vsub.f32 %v1793_v17, %v1794_v38 }
 0xe8b   : > { %v1797_v19 = vadd.f32 1e-05, %v1795_v18 }
 0xe8d   : > { %3754 = vrsqrt.f32 %v1797_v19 }
 0xe97   : > { %v3755_v21 = vpop.eup %3754 }
 0xe98   : > { %v1799_v23 = vmul.f32 %v3755_v21, %v1796_v20 }
 0xe9a   : > { %v1806_v25 = vmul.f32 %v3250_v22, %v1799_v23 }
 0xe9c   : > { %v1813_v26 = vadd.f32 %v3251_v24, %v1806_v25 }
 0xe9e   : > { %v1819_v28 = vpack.c.bf16 %v1813_v26, %v1813_v26 }
 0xea0   : > { %3541 = vmatmul.mubr.msk.bf16.vlgmr.msra.gmra.mrb[32].mxu1 %vm553_vm0, %v1819_v28  ;;  %3557 = vmatmul.mubr.msk.bf16.vlgmr.msra.gmra.mrb[36].mxu0 %vm553_vm0, %v1819_v28 }
 0xea1   : > { %3545 = vmatpush3.bf16.msra.mxu1 %v3720_v27  ;;  %3548 = vmatprep.mubr.msk.bf16.mxu1 %vm3845_vm1, %v3844_v6 }
 0xea2   : > { %3546 = vmatprep.subr.bf16.mxu1 %v3844_v6  ;;  %3568 = vmatprep.mubr.msk.bf16.mxu0 %vm3845_vm1, %v3844_v6 }
 0xea5   : > { %3547 = vmatpush3.bf16.msra.mxu1 %v3721_v29 }
 0xea6   : > { %3560 = vmatprep.subr.bf16.mxu1 %v3844_v6 }
 0xea8   : > { %3549 = vmatmul.mubr.msk.bf16.vlgmr.msra.gmra.mrb[36].mxu1 %vm553_vm0, %v1819_v28 }
 0xea9   : > { %3562 = vmatprep.mubr.msk.bf16.mxu1 %vm3845_vm1, %v3844_v6 }
 0xf73   : > { %v1877_v33 = vpop.f32.mrb[32].mxu1  ;;  %v2007_v34 = vpop.f32.mrb[36].mxu0 }
 0xf74   : > { %v1878_v35 = vadd.f32 %v3257_v30, %v1877_v33  ;;  %v2008_v36 = vadd.f32 %v3275_v32, %v2007_v34  ;;  %v3542_v37 = vpop.f32.mrb[33].mxu1  ;;  %v3558_v39 = vpop.f32.mrb[37].mxu0  ;;  %v3281_v34 = vld [vmem:[%s4531_s7 + $0x10] sm:$0xf] }
 0xf75   : > { %v1880_v40 = vpop.f32.mrb[34].mxu1  ;;  %v2010_v41 = vpop.f32.mrb[38].mxu0 }
 0xf76   : > { %v4285_v42 = vpack.c.bf16 %v1878_v35, %v1878_v35  ;;  %v4287_v43 = vpack.c.bf16 %v2008_v36, %v2008_v36  ;;  %v3543_v45 = vpop.f32.mrb[35].mxu1  ;;  %v3559_v46 = vpop.f32.mrb[39].mxu0  ;;  %v2359_v35 = vsel %vm819_vm2, %v3281_v34, 0  ;;  %v3284_v36 = vld [vmem:[%s4531_s7 + $0x14] sm:$0xf] }
 0xf77   : > { %v2313_v37 = vsel %vm819_vm2, %v3284_v36, 0 }
 0xf78   : > { %2195 = vrot.lane.b32.xlu1 %v4285_v42, %s4567_s21  ;;  %v2112_v47 = vsel %vm819_vm2, %v4287_v43, 0 }
 0xf79   : > { %3567 = vmatpush3.bf16.msra.mxu0 %v2112_v47 }
 0xf7a   : > { %3578 = vmatprep.subr.bf16.mxu0 %v3844_v6 }
 0xf7b   : > { %v1942_v49 = vpop.f32.mrb[36].mxu1 }
 0xf7c   : > { %v4297_v50 = vadd.f32 %v3266_v48, %v1942_v49  ;;  %v3550_v51 = vpop.f32.mrb[37].mxu1 }
 0xf7d   : > { %v1945_v52 = vpop.f32.mrb[38].mxu1 }
 0xf7e   : > { %2158 = vrot.lane.b32.xlu0 %v4297_v50, %s4567_s21  ;;  %v3551_v53 = vpop.f32.mrb[39].mxu1 }
 0xfa1   : > { %2013 = vxpose.xlu1.b32.start.end [1/1] (short) (narrow) %v4297_v50, 8 }
 0xfea   : > { %v2196_v44 = vpop.permute.xlu1 %2195 }
 0xff0   : > { %v2159_v54 = vpop.permute.xlu0 %2158 }
 0xff1   : > { %2161 = vxpose.xlu0.b32.start.end [1/1] (short) (narrow) %v2159_v54, 8 }
0x1021   : > { %v2029_v55 = vpop.trf.xlu1 }
0x1022   : > { %v2046_v56 = vpack.c.bf16 %v2029_v55, %v2029_v55 }
0x1024   : > { %v2051_v57 = vsel %vm819_vm2, %v2046_v56, 0 }
0x1025   : > { %3561 = vmatpush3.bf16.msra.mxu1 %v2051_v57 }
0x1026   : > { %3572 = vmatprep.subr.bf16.mxu1 %v3844_v6 }
0x1028   : > { %3563 = vmatmul.mubr.msk.bf16.vlgmr.msra.gmra.mrb[40].mxu1 %vm815_vm3, %v4285_v42 }
0x1029   : > { %3574 = vmatprep.mubr.msk.bf16.mxu1 %vm3845_vm1, %v3844_v6 }
0x1071   : > { %v2177_v58 = vpop.trf.xlu0 }
0x1072   : > { %v2193_v60 = vpack.c.bf16 %v2177_v58, %v2177_v58 }
0x1074   : > { %v2201_v61 = vsel %vm819_vm2, %v2193_v60, 0 }
0x1075   : > { %3573 = vmatpush3.bf16.msra.mxu1 %v2201_v61 }
0x1076   : > { %3584 = vmatprep.subr.bf16.mxu1 %v3844_v6 }
0x1078   : > { %3575 = vmatmul.mubr.msk.bf16.vlgmr.msra.gmra.mrb[44].mxu1 %vm815_vm3, %v2196_v44 }
0x1079   : > { %3586 = vmatprep.mubr.msk.bf16.mxu1 %vm3845_vm1, %v3844_v6  ;;  %3585 = vmatpush3.bf16.msra.mxu1 %v2313_v37 }
0x107a   : > { %3596 = vmatprep.subr.bf16.mxu1 %v3844_v6 }
0x10fb   : > { %v2087_v62 = vpop.f32.mrb[40].mxu1 }
0x10fc   : > { %v2093_v63 = vmul.f32 0.35355338, %v2087_v62  ;;  %v3564_v1 = vpop.f32.mrb[41].mxu1 }
0x10fd   : > { %v2090_v2 = vpop.f32.mrb[42].mxu1 }
0x10fe   : > { %v3565_v3 = vpop.f32.mrb[43].mxu1  ;;  %v2094_v4 = vsel %vm4080_vm4, %v2093_v63, -1e+30 }
0x10ff   : > { %v2095_v5 = vsel %vm815_vm3, %v2094_v4, -inf }
0x1100   : > { %2096 = vmax.xlane.f32.xlu0 %v2095_v5 }
0x114b   : > { %v2237_v9 = vpop.f32.mrb[44].mxu1 }
0x114c   : > { %v2243_v10 = vmul.f32 0.35355338, %v2237_v9  ;;  %v3576_v11 = vpop.f32.mrb[45].mxu1 }
0x114d   : > { %v2240_v0 = vpop.f32.mrb[46].mxu1 }
0x114e   : > { %v3577_v12 = vpop.f32.mrb[47].mxu1  ;;  %v2244_v7 = vsel %vm4080_vm4, %v2243_v10, -1e+30 }
0x114f   : > { %v2245_v13 = vsel %vm815_vm3, %v2244_v7, -inf }
0x1150   : > { %2246 = vmax.xlane.f32.xlu1 %v2245_v13 }
0x118d   : > { %v2097_v14 = vpop.xlane.xlu0 %2096 }
0x118e   : > { %v2098_v31 = vsub.f32 %v2094_v4, %v2097_v14 }
0x1190   : > { %v2099_v15 = vmul.f32 1.442695, %v2098_v31 }
0x1192   : > { %3756 = vpow2.f32 %v2099_v15 }
0x119c   : > { %v3757_v16 = vpop.eup %3756 }
0x119d   : > { %v2101_v38 = vsel %vm815_vm3, %v3757_v16, 0.0 }
0x119e   : > { %2102 = vadd.xlane.f32.xlu0 %v2101_v38  ;;  %v3289_v38 = vld [vmem:[%s4531_s7 + $0x18] sm:$0xf] }
0x11b4   : > { %2258 = vrot.lane.b32.xlu0 %v4287_v43, %s4567_s21 }
0x11dd   : > { %v2247_v17 = vpop.xlane.xlu1 %2246 }
0x11de   : > { %v2248_v18 = vsub.f32 %v2244_v7, %v2247_v17  ;;  %v2554_v17 = vsel %vm819_vm2, %v3289_v38, 0 }
0x11e0   : > { %v2249_v19 = vmul.f32 1.442695, %v2248_v18 }
0x11e2   : > { %3758 = vpow2.f32 %v2249_v19 }
0x11ec   : > { %v3759_v20 = vpop.eup %3758 }
0x11ed   : > { %v2251_v21 = vsel %vm815_vm3, %v3759_v20, 0.0 }
0x11ee   : > { %2252 = vadd.xlane.f32.xlu1 %v2251_v21 }
0x11ff   : > { %2401 = vrot.lane.b32.xlu1 %v4297_v50, %s4568_s26 }
0x1203   : > { %2437 = vrot.lane.b32.xlu1 %v4285_v42, %s4568_s26 }
0x122b   : > { %v2103_v22 = vpop.xlane.xlu0 %2102 }
0x122c   : > { %3760 = vrcp.f32 %v2103_v22 }
0x122f   : > { %v2259_v25 = vpop.permute.xlu0 %2258 }
0x1230   : > { %v2264_v27 = vsel %vm819_vm2, %v2259_v25, 0 }
0x1236   : > { %v3761_v23 = vpop.eup %3760 }
0x1237   : > { %v2105_v24 = vmul.f32 %v3761_v23, %v3757_v16 }
0x1239   : > { %v2106_v26 = vpack.c.bf16 %v2105_v24, %v2105_v24 }
0x123b   : > { %3569 = vmatmul.mubr.msk.bf16.vlgmr.msra.gmra.mrb[40].mxu0 %vm815_vm3, %v2106_v26 }
0x123c   : > { %3579 = vmatpush3.bf16.msra.mxu0 %v2264_v27  ;;  %3580 = vmatprep.mubr.msk.bf16.mxu0 %vm3845_vm1, %v3844_v6 }
0x123d   : > { %3590 = vmatprep.subr.bf16.mxu0 %v3844_v6 }
0x127b   : > { %v2253_v28 = vpop.xlane.xlu1 %2252 }
0x127c   : > { %3762 = vrcp.f32 %v2253_v28 }
0x127f   : > { %v2402_v29 = vpop.permute.xlu1 %2401 }
0x1280   : > { %2404 = vxpose.xlu0.b32.start.end [1/1] (short) (narrow) %v2402_v29, 8 }
0x1283   : > { %v2438_v44 = vpop.permute.xlu1 %2437 }
0x1286   : > { %v3763_v30 = vpop.eup %3762 }
0x1287   : > { %v2255_v32 = vmul.f32 %v3763_v30, %v3759_v20 }
0x1289   : > { %v2256_v33 = vpack.c.bf16 %v2255_v32, %v2255_v32 }
0x128b   : > { %3581 = vmatmul.mubr.msk.bf16.vlgmr.msra.gmra.mrb[44].mxu0 %vm815_vm3, %v2256_v33 }
0x128c   : > { %3592 = vmatprep.mubr.msk.bf16.mxu0 %vm3845_vm1, %v3844_v6  ;;  %3591 = vmatpush3.bf16.msra.mxu0 %v2359_v35 }
0x128d   : > { %3602 = vmatprep.subr.bf16.mxu0 %v3844_v6 }
0x12a9   : > { %2597 = vrot.lane.b32.xlu0 %v4297_v50, %s4569_s18 }
0x1300   : > { %v2420_v47 = vpop.trf.xlu0 }
0x1301   : > { %v2436_v48 = vpack.c.bf16 %v2420_v47, %v2420_v47 }
0x1303   : > { %v2443_v50 = vsel %vm819_vm2, %v2436_v48, 0 }
0x130e   : > { %v2148_v39 = vpop.f32.mrb[40].mxu0 }
0x130f   : > { %v2156_v40 = vpack.c.bf16 %v2148_v39, %v2148_v39  ;;  %v3570_v41 = vpop.f32.mrb[41].mxu0 }
0x1310   : > { %v2151_v45 = vpop.f32.mrb[42].mxu0 }
0x1311   : > { %v3571_v46 = vpop.f32.mrb[43].mxu0  ;;  %3593 = vmatmul.mubr.msk.bf16.vlgmr.msra.gmra.mrb[48].mxu0 %vm815_vm3, %v2156_v40 }
0x1312   : > { %3604 = vmatprep.mubr.msk.bf16.mxu0 %vm3845_vm1, %v3844_v6 }
0x131b   : > { %v2598_v16 = vpop.permute.xlu0 %2597 }
0x135e   : > { %v2300_v49 = vpop.f32.mrb[44].mxu0 }
0x135f   : > { %v2308_v51 = vpack.c.bf16 %v2300_v49, %v2300_v49  ;;  %v3582_v52 = vpop.f32.mrb[45].mxu0 }
0x1360   : > { %v2303_v53 = vpop.f32.mrb[46].mxu0 }
0x1361   : > { %v3583_v54 = vpop.f32.mrb[47].mxu0  ;;  %3587 = vmatmul.mubr.msk.bf16.vlgmr.msra.gmra.mrb[48].mxu1 %vm815_vm3, %v2308_v51 }
0x1362   : > { %3597 = vmatpush3.bf16.msra.mxu1 %v2443_v50  ;;  %3598 = vmatprep.mubr.msk.bf16.mxu1 %vm3845_vm1, %v3844_v6 }
0x1363   : > { %3608 = vmatprep.subr.bf16.mxu1 %v3844_v6 }
0x1369   : > { %3599 = vmatmul.mubr.msk.bf16.vlgmr.msra.gmra.mrb[52].mxu1 %vm815_vm3, %v2438_v44 }
0x136a   : > { %3610 = vmatprep.mubr.msk.bf16.mxu1 %vm3845_vm1, %v3844_v6  ;;  %3609 = vmatpush3.bf16.msra.mxu1 %v2554_v17 }
0x136b   : > { %3620 = vmatprep.subr.bf16.mxu1 %v3844_v6 }
0x13e4   : > { %v2395_v55 = vpop.f32.mrb[48].mxu0 }
0x13e5   : > { %v3594_v56 = vpop.f32.mrb[49].mxu0 }
0x13e6   : > { %v2398_v57 = vpop.f32.mrb[50].mxu0 }
0x13e7   : > { %v3595_v58 = vpop.f32.mrb[51].mxu0 }
0x1434   : > { %v2349_v60 = vpop.f32.mrb[48].mxu1 }
0x1435   : > { %v4358_v61 = vadd.f32 %v2395_v55, %v2349_v60  ;;  %v3588_v62 = vpop.f32.mrb[49].mxu1  ;;  %v3293_v55 = vld [vmem:[%s4531_s7 + $0x1c] sm:$0xf] }
0x1436   : > { %v2352_v63 = vpop.f32.mrb[50].mxu1  ;;  %v2750_v56 = vsel %vm819_vm2, %v3293_v55, 0 }
0x1437   : > { %v3589_v1 = vpop.f32.mrb[51].mxu1 }
0x1438   : > { %v3296_v1 = vld [vmem:[%s4532_s8 + $0x1] ss:$0 sm:$0xff] }
0x143c   : > { %v2479_v2 = vpop.f32.mrb[52].mxu1 }
0x143d   : > { %v2485_v3 = vmul.f32 0.35355338, %v2479_v2  ;;  %v3600_v4 = vpop.f32.mrb[53].mxu1 }
0x143e   : > { %v2482_v5 = vpop.f32.mrb[54].mxu1 }
0x143f   : > { %v3601_v9 = vpop.f32.mrb[55].mxu1  ;;  %v2486_v10 = vsel %vm4080_vm4, %v2485_v3, -1e+30 }
0x1440   : > { %v2487_v11 = vsel %vm815_vm3, %v2486_v10, -inf }
0x1441   : > { %2488 = vmax.xlane.f32.xlu1 %v2487_v11 }
0x1452   : > { %2499 = vrot.lane.b32.xlu1 %v4287_v43, %s4568_s26  ;;  %s537_s26 = sand.u32 1, %s3834_s25  }
0x1453   : > { %s3194_s22 = sshll.u32 %s537_s26, 3  ;;  %s3118_s0 = scalar_lea.sflag [#allocation3], %s537_s26 }
0x1454   : > { %s539_s23 = scalar_lea.vmem [#allocation2], %s3194_s22  ;;  %s3849_s22 = smov [#allocation2]  }
0x1455   : > { %s3131_s21 = sshll.u32 %s539_s23, 4  ;;  %s4484_s21 = int_to_ptr.vmem [resolvable:$true] %s3131_s21 }
0x1456   : > { %s3780_s28 = scalar_lea.vmem %s4484_s21, 128 }
0x1457   : > { %p3781_p11 = scmp.ne.s32.totalorder %s4484_s21, %s3780_s28 }
0x1459   : > { %p3782_p12 = pnand %p3781_p11, %p3978_p5 }
0x145b   : > { %p3783_p13 = pneg %p3782_p12 }
0x14ce   : > { %v2489_v0 = vpop.xlane.xlu1 %2488 }
0x14cf   : > { %v2490_v12 = vsub.f32 %v2486_v10, %v2489_v0 }
0x14d1   : > { %v2491_v7 = vmul.f32 1.442695, %v2490_v12 }
0x14d2   : > { %v2500_v13 = vpop.permute.xlu1 %2499 }
0x14d3   : > { %3764 = vpow2.f32 %v2491_v7  ;;  %v2505_v14 = vsel %vm819_vm2, %v2500_v13, 0  ;;  %v3722_v7 = vld [vmem:[%s4533_s9 + $0x10] sm:$0xff]  }
0x14d4   : > { %3603 = vmatpush3.bf16.msra.mxu0 %v2505_v14 }
0x14d5   : > { %3614 = vmatprep.subr.bf16.mxu0 %v3844_v6 }
0x14dd   : > { %v3765_v31 = vpop.eup %3764 }
0x14de   : > { %v2493_v15 = vsel %vm815_vm3, %v3765_v31, 0.0 }
0x14df   : > { %2494 = vadd.xlane.f32.xlu1 %v2493_v15 }
0x14f0   : > { %2633 = vrot.lane.b32.xlu1 %v4285_v42, %s4569_s18 }
0x1519   : > { %2600 = vxpose.xlu1.b32.start.end [1/1] (short) (narrow) %v2598_v16, 8 }
0x1537   : > { %2695 = vrot.lane.b32.xlu1 %v4287_v43, %s4569_s18  ;;  %s3784_s18 = sshll.u32 %s3849_s22, 4  ;;  %s3785_s18 = int_to_ptr.vmem [resolvable:$false] %s3784_s18 }
0x1538   : > { %s3786_s29 = scalar_lea.vmem %s3785_s18, 256  ;;  %p3787_p0 = scmp.lt.s32.totalorder %s4484_s21, %s3785_s18 }
0x1539   : > { %p3788_p1 = scmp.lt.s32.totalorder %s3786_s29, %s3780_s28 }
0x153b   : > { %p3789_p2 = por %p3788_p1, %p3787_p0 }
0x153d   : > { %p3790_p3 = pnand %p3789_p2, %p3783_p13 }
0x156c   : > { %v2495_v18 = vpop.xlane.xlu1 %2494 }
0x156d   : > { %3766 = vrcp.f32 %v2495_v18 }
0x1570   : > { %v2634_v42 = vpop.permute.xlu1 %2633 }
0x1577   : > { %v3767_v19 = vpop.eup %3766 }
0x1578   : > { %v2497_v20 = vmul.f32 %v3767_v19, %v3765_v31 }
0x157a   : > { %v2498_v21 = vpack.c.bf16 %v2497_v20, %v2497_v20  ;;  %v3299_v20 = vld [vmem:[%s4566_s3 + $0x1] ss:$0 sm:$0xff]  ;;  %s4482_s3 = scalar_lea.hbm %s4541_s17, %s3332_s2 }
0x157c   : > { %3605 = vmatmul.mubr.msk.bf16.vlgmr.msra.gmra.mrb[52].mxu0 %vm815_vm3, %v2498_v21 }
0x157d   : > { %3616 = vmatprep.mubr.msk.bf16.mxu0 %vm3845_vm1, %v3844_v6 }
0x1599   : > { %v2616_v22 = vpop.trf.xlu1 }
0x159a   : > { %v2632_v23 = vpack.c.bf16 %v2616_v22, %v2616_v22 }
0x159c   : > { %v2639_v24 = vsel %vm819_vm2, %v2632_v23, 0 }
0x159d   : > { %3615 = vmatpush3.bf16.msra.mxu0 %v2639_v24 }
0x159e   : > { %3626 = vmatprep.subr.bf16.mxu0 %v3844_v6 }
0x15a0   : > { %3617 = vmatmul.mubr.msk.bf16.vlgmr.msra.gmra.mrb[56].mxu0 %vm815_vm3, %v2634_v42  ;;  %v3300_v42 = vld [vmem:[%s4528_s4 + $0x1] ss:$0 sm:$0xff] }
0x15a1   : > { %3628 = vmatprep.mubr.msk.bf16.mxu0 %vm3845_vm1, %v3844_v6  ;;  %3627 = vmatpush3.bf16.msra.mxu0 %v2750_v56 }
0x15a2   : > { %3640 = vmatprep.subr.bf16.mxu0 %v3844_v6 }
0x15a9   : > { %v2696_v43 = vpop.permute.xlu1 %2695 }
0x15aa   : > { %v2701_v29 = vsel %vm819_vm2, %v2696_v43, 0  ;;  %v3724_v43 = vld [vmem:[%s4535_s11 + $0x20] sm:$0xff]  }
0x164f   : > { %v2541_v25 = vpop.f32.mrb[52].mxu0 }
0x1650   : > { %v2549_v26 = vpack.c.bf16 %v2541_v25, %v2541_v25  ;;  %v3606_v27 = vpop.f32.mrb[53].mxu0  ;;  %v3725_v25 = vld [vmem:[%s4535_s11 + $0x28] sm:$0xff]  }
0x1651   : > { %v2544_v28 = vpop.f32.mrb[54].mxu0  ;;  %v3727_v27 = vld [vmem:[%s4535_s11 + $0x38] sm:$0xff]  }
0x1652   : > { %v3607_v30 = vpop.f32.mrb[55].mxu0  ;;  %3611 = vmatmul.mubr.msk.bf16.vlgmr.msra.gmra.mrb[56].mxu1 %vm815_vm3, %v2549_v26  ;;  %v3726_v26 = vld [vmem:[%s4535_s11 + $0x30] sm:$0xff]   ;;  %v3306_v28 = vld [vmem:[%s4534_s10 + $0x1] ss:$0 sm:$0xff] }
0x1653   : > { %3621 = vmatpush3.bf16.msra.mxu1 %v2701_v29  ;;  %3622 = vmatprep.mubr.msk.bf16.mxu1 %vm3845_vm1, %v3844_v6 }
0x1654   : > { %3632 = vmatprep.subr.bf16.mxu1 %v3844_v6 }
0x1673   : > { %v2675_v32 = vpop.f32.mrb[56].mxu0 }
0x1674   : > { %v2681_v33 = vmul.f32 0.35355338, %v2675_v32  ;;  %v3618_v34 = vpop.f32.mrb[57].mxu0 }
0x1675   : > { %v2678_v35 = vpop.f32.mrb[58].mxu0 }
0x1676   : > { %v3619_v36 = vpop.f32.mrb[59].mxu0  ;;  %v2682_v37 = vsel %vm4080_vm4, %v2681_v33, -1e+30 }
0x1677   : > { %v2683_v39 = vsel %vm815_vm3, %v2682_v37, -inf }
0x1678   : > { %2684 = vmax.xlane.f32.xlu0 %v2683_v39 }
0x1705   : > { %v2685_v40 = vpop.xlane.xlu0 %2684 }
0x1706   : > { %v2686_v41 = vsub.f32 %v2682_v37, %v2685_v40 }
0x1708   : > { %v2687_v45 = vmul.f32 1.442695, %v2686_v41 }
0x170a   : > { %3768 = vpow2.f32 %v2687_v45 }
0x1714   : > { %v3769_v46 = vpop.eup %3768 }
0x1715   : > { %v2689_v47 = vsel %vm815_vm3, %v3769_v46, 0.0 }
0x1716   : > { %2690 = vadd.xlane.f32.xlu0 %v2689_v47 }
0x1725   : > { %v2590_v48 = vpop.f32.mrb[56].mxu1 }
0x1726   : > { %v2596_v49 = vadd.f32 %v2590_v48, %v4358_v61  ;;  %v3612_v50 = vpop.f32.mrb[57].mxu1 }
0x1727   : > { %v2593_v51 = vpop.f32.mrb[58].mxu1 }
0x1728   : > { %v3613_v52 = vpop.f32.mrb[59].mxu1 }
0x17a3   : > { %v2691_v53 = vpop.xlane.xlu0 %2690 }
0x17a4   : > { %3770 = vrcp.f32 %v2691_v53 }
0x17ae   : > { %v3771_v59 = vpop.eup %3770 }
0x17af   : > { %v2693_v54 = vmul.f32 %v3771_v59, %v3769_v46 }
0x17b1   : > { %v2694_v44 = vpack.c.bf16 %v2693_v54, %v2693_v54 }
0x17b3   : > { %3623 = vmatmul.mubr.msk.bf16.vlgmr.msra.gmra.mrb[60].mxu1 %vm815_vm3, %v2694_v44 }
0x17b4   : > { %3636 = vmatprep.mubr.msk.bf16.mxu1 %vm3845_vm1, %v3844_v6  ;;  %3633 = vmatpush3.bf16.msra.mxu1 %v3722_v7 }
0x17b5   : > { %3634 = vmatprep.subr.bf16.mxu1 %v3844_v6 }
0x1886   : > { %v2737_v57 = vpop.f32.mrb[60].mxu1 }
0x1887   : > { %v2745_v58 = vpack.c.bf16 %v2737_v57, %v2737_v57  ;;  %v3624_v60 = vpop.f32.mrb[61].mxu1 }
0x1888   : > { %v2740_v61 = vpop.f32.mrb[62].mxu1 }
0x1889   : > { %v3625_v62 = vpop.f32.mrb[63].mxu1  ;;  %3629 = vmatmul.mubr.msk.bf16.vlgmr.msra.gmra.mrb[60].mxu0 %vm815_vm3, %v2745_v58 }
0x188a   : > { %3648 = vmatprep.mubr.msk.bf16.mxu0 %vm3845_vm1, %v3844_v6  ;;  %3641 = vmatpush3.bf16.msra.mxu0 %v3724_v43 }
0x188b   : > { %3642 = vmatprep.subr.bf16.mxu0 %v3844_v6 }
0x188e   : > { %3643 = vmatpush3.bf16.msra.mxu0 %v3725_v25 }
0x188f   : > { %3644 = vmatprep.subr.bf16.mxu0 %v3844_v6 }
0x1892   : > { %3645 = vmatpush3.bf16.msra.mxu0 %v3726_v26 }
0x1893   : > { %3646 = vmatprep.subr.bf16.mxu0 %v3844_v6 }
0x1896   : > { %3647 = vmatpush3.bf16.msra.mxu0 %v3727_v27 }
0x195c   : > { %v2786_v63 = vpop.f32.mrb[60].mxu0 }
0x195d   : > { %v2792_v2 = vadd.f32 %v2786_v63, %v2596_v49  ;;  %v3630_v3 = vpop.f32.mrb[61].mxu0 }
0x195e   : > { %v2789_v4 = vpop.f32.mrb[62].mxu0 }
0x195f   : > { %v2801_v5 = vadd.f32 %v3296_v1, %v2792_v2  ;;  %v3631_v9 = vpop.f32.mrb[63].mxu0  ;;  %v3319_v1 = vld [vmem:[%s4536_s12 + $0x1] ss:$0 sm:$0xff] }
0x1961   : > { %v4410_v10 = vadd.f32 %v2801_v5, %v4232_v8  ;;  %v3723_v8 = vld [vmem:[%s4533_s9 + $0x18] sm:$0xff]  }
0x1962   : > { %3635 = vmatpush3.bf16.msra.mxu1 %v3723_v8  ;;  %v3728_v8 = vld [vmem:[%s4539_s15] sm:$0xff]  }
0x1963   : > { %v2807_v11 = vsel %vm553_vm0, %v4410_v10, 0.0  ;;  %v2811_v0 = vmul.f32 %v4410_v10, %v4410_v10  ;;  %3652 = vmatprep.subr.bf16.mxu1 %v3844_v6 }
0x1964   : > { %2808 = vadd.xlane.f32.xlu0 %v2807_v11 }
0x1965   : > { %v2812_v12 = vsel %vm553_vm0, %v2811_v0, 0.0 }
0x1968   : > { %2813 = vadd.xlane.f32.xlu0 %v2812_v12 }
0x19f1   : > { %v2809_v13 = vpop.xlane.xlu0 %2808 }
0x19f2   : > { %v2810_v14 = vmul.f32 0.03125, %v2809_v13  ;;  %v3729_v13 = vld [vmem:[%s4539_s15 + $0x8] sm:$0xff]  }
0x19f4   : > { %v2816_v15 = vmul.f32 %v2810_v14, %v2810_v14  ;;  %v2818_v18 = vsub.f32 %v4410_v10, %v2810_v14 }
0x19f5   : > { %v2814_v31 = vpop.xlane.xlu0 %2813 }
0x19f6   : > { %v2815_v16 = vmul.f32 0.03125, %v2814_v31 }
0x19f8   : > { %v2817_v38 = vsub.f32 %v2815_v16, %v2816_v15 }
0x19fa   : > { %v2819_v17 = vadd.f32 1e-05, %v2817_v38 }
0x19fc   : > { %3772 = vrsqrt.f32 %v2819_v17 }
0x1a06   : > { %v3773_v19 = vpop.eup %3772 }
0x1a07   : > { %v2821_v21 = vmul.f32 %v3773_v19, %v2818_v18 }
0x1a09   : > { %v2828_v22 = vmul.f32 %v3299_v20, %v2821_v21  ;;  %v3325_v20 = vld [vmem:[%s4537_s13] ss:$0 sm:$0xff] }
0x1a0b   : > { %v2835_v23 = vadd.f32 %v3300_v42, %v2828_v22 }
0x1a0d   : > { %v2841_v24 = vpack.c.bf16 %v2835_v23, %v2835_v23 }
0x1a0f   : > { %3637 = vmatmul.mubr.msk.bf16.vlgmr.msra.gmra.mrb[64].mxu1 %vm553_vm0, %v2841_v24  ;;  %v3327_v24 = vld [vmem:[%s4540_s16] ss:$0 sm:$0xff] }
0x1a10   : > { %3656 = vmatprep.mubr.msk.bf16.mxu1 %vm3845_vm1, %v3844_v6  ;;  %3653 = vmatpush3.bf16.msra.mxu1 %v3728_v8 }
0x1a11   : > { %3654 = vmatprep.subr.bf16.mxu1 %v3844_v6  ;;  %v3326_v6 = vld [vmem:[%s4538_s14] ss:$0 sm:$0xff] }
0x1a14   : > { %3655 = vmatpush3.bf16.msra.mxu1 %v3729_v13 }
0x1ae2   : > { %v2899_v29 = vpop.f32.mrb[64].mxu1 }
0x1ae3   : > { %v2900_v30 = vadd.f32 %v3306_v28, %v2899_v29  ;;  %v3638_v32 = vpop.f32.mrb[65].mxu1 }
0x1ae4   : > { %v2902_v33 = vpop.f32.mrb[66].mxu1 }
0x1ae5   : > { %v2906_v34 = vmul.f32 0.70710677, %v2900_v30  ;;  %v3639_v35 = vpop.f32.mrb[67].mxu1  ;;  %v2905_v60 = vmul.f32 0.5, %v2900_v30 }
0x1ae7   : > { %v2907_v36 = vand.u32 2147483647, %v2906_v34  ;;  %vm2927_vm7 = vcmp.lt.f32.partialorder %v2906_v34, 0.0 }
0x1ae9   : > { %v2908_v37 = vmul.f32 0.3275911, %v2907_v36  ;;  %v2921_v40 = vsub.f32 0.0, %v2907_v36 }
0x1aeb   : > { %v2909_v39 = vadd.f32 1.0, %v2908_v37  ;;  %v2922_v45 = vmul.f32 %v2921_v40, %v2907_v36 }
0x1aed   : > { %3774 = vrcp.f32 %v2909_v39  ;;  %v2923_v48 = vmul.f32 1.442695, %v2922_v45 }
0x1aef   : > { %3776 = vpow2.f32 %v2923_v48 }
0x1af7   : > { %v3775_v41 = vpop.eup %3774 }
0x1af8   : > { %v2912_v46 = vmul.f32 1.0614054, %v3775_v41 }
0x1af9   : > { %v3777_v44 = vpop.eup %3776 }
0x1afa   : > { %v2913_v47 = vadd.f32 -1.4531521, %v2912_v46 }
0x1afc   : > { %v2914_v49 = vmul.f32 %v3775_v41, %v2913_v47 }
0x1afe   : > { %v2915_v50 = vadd.f32 1.4214138, %v2914_v49 }
0x1b00   : > { %v2916_v51 = vmul.f32 %v3775_v41, %v2915_v50 }
0x1b02   : > { %v2917_v52 = vadd.f32 -0.28449672, %v2916_v51 }
0x1b04   : > { %v2918_v53 = vmul.f32 %v3775_v41, %v2917_v52 }
0x1b06   : > { %v2919_v59 = vadd.f32 0.2548296, %v2918_v53 }
0x1b08   : > { %v2920_v54 = vmul.f32 %v3775_v41, %v2919_v59 }
0x1b0a   : > { %v2925_v55 = vmul.f32 %v3777_v44, %v2920_v54 }
0x1b0c   : > { %v2926_v56 = vsub.f32 1.0, %v2925_v55 }
0x1b0e   : > { %v2928_v57 = vsub.f32 0.0, %v2926_v56 }
0x1b10   : > { %v2929_v58 = vsel %vm2927_vm7, %v2928_v57, %v2926_v56 }
0x1b11   : > { %v2930_v61 = vadd.f32 1.0, %v2929_v58 }
0x1b13   : > { %v2931_v62 = vmul.f32 %v2930_v61, %v2905_v60 }
0x1b15   : > { %v2941_v63 = vpack.c.bf16 %v2931_v62, %v2931_v62 }
0x1b17   : > { %3649 = vmatmul.mubr.msk.bf16.vlgmr.msra.gmra.mrb[64].mxu0 %vm1736_vm6, %v2941_v63 }
0x1bea   : > { %v3011_v2 = vpop.f32.mrb[64].mxu0 }
0x1beb   : > { %v3012_v3 = vadd.f32 %v3319_v1, %v3011_v2  ;;  %v3650_v4 = vpop.f32.mrb[65].mxu0 }
0x1bec   : > { %v3014_v5 = vpop.f32.mrb[66].mxu0 }
0x1bed   : > { %v3017_v9 = vadd.f32 %v3012_v3, %v4410_v10  ;;  %v3651_v11 = vpop.f32.mrb[67].mxu0 }
0x1bef   : > { %v3020_v0 = vsel %vm553_vm0, %v3017_v9, 0.0  ;;  %v3024_v12 = vmul.f32 %v3017_v9, %v3017_v9 }
0x1bf0   : > { %3021 = vadd.xlane.f32.xlu0 %v3020_v0 }
0x1bf1   : > { %v3025_v7 = vsel %vm553_vm0, %v3024_v12, 0.0 }
0x1bf4   : > { %3026 = vadd.xlane.f32.xlu0 %v3025_v7 }
0x1c7d   : > { %v3022_v10 = vpop.xlane.xlu0 %3021 }
0x1c7e   : > { %v3023_v14 = vmul.f32 0.03125, %v3022_v10 }
0x1c80   : > { %v3029_v15 = vmul.f32 %v3023_v14, %v3023_v14  ;;  %v3031_v18 = vsub.f32 %v3017_v9, %v3023_v14 }
0x1c81   : > { %v3027_v31 = vpop.xlane.xlu0 %3026 }
0x1c82   : > { %v3028_v16 = vmul.f32 0.03125, %v3027_v31 }
0x1c84   : > { %v3030_v38 = vsub.f32 %v3028_v16, %v3029_v15 }
0x1c86   : > { %v3032_v17 = vadd.f32 1e-05, %v3030_v38 }
0x1c88   : > { %3778 = vrsqrt.f32 %v3032_v17 }
0x1c92   : > { %v3779_v19 = vpop.eup %3778 }
0x1c93   : > { %v3034_v21 = vmul.f32 %v3779_v19, %v3031_v18 }
0x1c95   : > { %v3041_v42 = vmul.f32 %v3325_v20, %v3034_v21 }
0x1c97   : > { %v3048_v22 = vadd.f32 %v3326_v6, %v3041_v42 }
0x1c99   : > { %v3053_v23 = vpack.c.bf16 %v3048_v22, %v3048_v22 }
0x1c9b   : > { %3657 = vmatmul.mubr.msk.bf16.vlgmr.msra.gmra.mrb[68].mxu1 %vm553_vm0, %v3053_v23 }
0x1d6e   : > { %v3110_v43 = vpop.f32.mrb[68].mxu1 }
0x1d6f   : > { %v3111_v25 = vadd.f32 %v3327_v24, %v3110_v43  ;;  %v3658_v26 = vpop.f32.mrb[69].mxu1 }
0x1d70   : > { %v3113_v27 = vpop.f32.mrb[70].mxu1 }
0x1d71   : > { %3116 = vst [vmem:[%s539_s23] sm:$0xff] %v3111_v25  ;;  %v3659_v28 = vpop.f32.mrb[71].mxu1 }
0x1d72   : > { %3793 = shalt.err (!%p3790_p3)
}
0x1d73   : > { %s3794_s2 = scalar_lea.hbm %s4482_s3, 128  ;;  %s3798_s30 = scalar_lea.hbm %s4541_s17, 256 }
0x1d74   : > { %p3795_p4 = scmp.ne.s32.totalorder %s4482_s3, %s3794_s2  ;;  %p3799_p9 = scmp.lt.u32.totalorder %s4482_s3, %s4541_s17 }
0x1d75   : > { %p3800_p10 = scmp.lt.u32.totalorder %s3798_s30, %s3794_s2  ;;  %p3802_p12 = scmp.lt.u32.totalorder %s3794_s2, %s4482_s3 }
0x1d76   : > { %p3796_p7 = pnand %p3795_p4, %p3978_p5 }
0x1d77   : > { %p3801_p11 = por %p3800_p10, %p3799_p9 }
0x1d78   : > { %p3797_p8 = pneg %p3796_p7 }
0x1d79   : > { %p3803_p13 = por %p3802_p12, %p3801_p11 }
0x1d7b   : > { %p3804_p0 = pnand %p3803_p13, %p3797_p8 }
0x1d7d   : > { %3807 = shalt.err (!%p3804_p0)
}
0x1d7e   : > { %3660 = dma.vmem_to_hbm [thread:$0]  (%p3978_p5), %s4484_s21, 128, %s4482_s3, %s3118_s0  }
0x1d7f PF: > { %p3666_p1 = scmp.ge.s32.totalorder %s3842_s27, 2  ;;  %s3143_s28 = sand.u32 1, %s3830_s24  }
0x1d80   : > { %s3144_s29 = scalar_lea.sflag [#allocation3], %s3143_s28 }
0x1d81   : > { %p3663_p2 = pnand %p3666_p1, %p3982_p6 }
0x1d83   : > { %3825 = dma.done.wait (!%p3663_p2), %s3144_s29, 128  }
0x1d84   : > { %3827 = vsyncadd (!%p3663_p2), %s3144_s29, 4294967168  ;;  %s4570_s27 = sld [smem:[#allocation6_spill]]  ;;  %s4571_s2 = sld [smem:[#allocation5_spill]] }
0x1d85   : > { %s4572_s26 = sld [smem:[#allocation7_spill]]  ;;  %s4573_s24 = smov %s3834_s25 }
0x1d8a   : > { %p27_p3 = scmp.ge.s32.totalorder %s4570_s27, 4   ;;  %s4574_s25 = smov %s4571_s2 }
0x1d8c   :  { %29 = sbr.rel (!%p27_p3) target bundleno = 8 (0x8), region = 149 }
0x1d93   :  { %3149 = vsyncpa [#allocation3], 1 }
0x1d94   :  { %3151 = vsyncpa [#allocation3 + $0x1], 1 }

</bundles_post_ra>
